<compile_context>
chip_gen: v6e
topology: v6e:2x2x1
jax: 0.10.0
libtpu: 0.0.40
codegen_flags: <defaults>
</compile_context>

<pallas_src>
import functools
import math

import jax
import jax.numpy as jnp
from jax.experimental import pallas as pl
from jax.experimental.pallas import tpu as pltpu


PARAM_ORDER = [
    "w1h", "b1h", "w2h", "b2h",
    "w1l", "b1l", "w2l", "b2l",
    "wf_hi_t", "wf_lo_t", "bf",
    "wqkv", "bqkv",
    "wo", "bo",
]


def _traj_kernel(x_ref, wlow_ref,
                 w1h_ref, b1h_ref, w2h_ref, b2h_ref,
                 w1l_ref, b1l_ref, w2l_ref, b2l_ref,
                 wf_hi_ref, wf_lo_ref, bf_ref,
                 wqkv_ref, bqkv_ref,
                 wo_ref, bo_ref,
                 o_ref, *, num_heads, head_dim, hidden_dim, block_b, seq_len):
    f32 = jnp.float32
    H = hidden_dim
    hd = head_dim
    T = seq_len
    BT = block_b * T

    x = x_ref[...]                                   # (Bb, T, D)
    wlow = wlow_ref[...]                             # (T, T)

    # --- Fourier decoupling: low = wlow @ x_b per batch element; high = x - low
    # (whigh == I - wlow exactly, so no second filter matmul is needed).
    lows = [jnp.dot(wlow, x[b], preferred_element_type=f32)
            for b in range(block_b)]
    low_f = jnp.concatenate(lows, axis=0)            # (Bb*T, D)
    x_flat = x.reshape(BT, x.shape[-1])
    high_f = x_flat - low_f                          # (Bb*T, D)

    def mlp(z, w1, b1, w2, b2):
        h = jnp.maximum(jnp.dot(z, w1, preferred_element_type=f32) + b1, 0.0)
        return jnp.dot(h, w2, preferred_element_type=f32) + b2

    hf = mlp(high_f, w1h_ref[...], b1h_ref[...], w2h_ref[...], b2h_ref[...])  # (BT, H)
    lf = mlp(low_f, w1l_ref[...], b1l_ref[...], w2l_ref[...], b2l_ref[...])   # (BT, H)

    # --- fusion gate: sigmoid(cat([hf, lf], -1) @ Wf + bf), done as VPU
    # multiplies + lane (XLU) reductions instead of an (·,2H)@(2H,2) MXU matmul.
    wf_hi = wf_hi_ref[...]                           # (2, H): row g = Wf[g, :H]
    wf_lo = wf_lo_ref[...]                           # (2, H): row g = Wf[g, H:]
    bf = bf_ref[...]                                 # (1, 2)
    l0 = (jnp.sum(hf * wf_hi[0:1, :], axis=-1, keepdims=True)
          + jnp.sum(lf * wf_lo[0:1, :], axis=-1, keepdims=True)
          + bf[0:1, 0:1])
    l1 = (jnp.sum(hf * wf_hi[1:2, :], axis=-1, keepdims=True)
          + jnp.sum(lf * wf_lo[1:2, :], axis=-1, keepdims=True)
          + bf[0:1, 1:2])
    g0 = jax.nn.sigmoid(l0)
    g1 = jax.nn.sigmoid(l1)
    fused = g0 * lf + g1 * hf                        # (BT, H)

    # --- fused q/k/v projection: one (BT, H) @ (H, 3H) matmul.
    qkv = jnp.dot(fused, wqkv_ref[...], preferred_element_type=f32) + bqkv_ref[...]
    qkv_b = qkv.reshape(block_b, T, 3 * H)

    scale = 1.0 / math.sqrt(hd)
    ctx_rows = []
    for b in range(block_b):
        heads = []
        for h in range(num_heads):
            q = qkv_b[b, :, h * hd:(h + 1) * hd] * scale          # (T, hd)
            k = qkv_b[b, :, H + h * hd:H + (h + 1) * hd]
            v = qkv_b[b, :, 2 * H + h * hd:2 * H + (h + 1) * hd]
            s = jnp.dot(q, k.T, preferred_element_type=f32)       # (T, T)
            s = s - jnp.max(s, axis=-1, keepdims=True)
            p = jnp.exp(s)
            p = p * pl.reciprocal(jnp.sum(p, axis=-1, keepdims=True), approx=True)
            heads.append(jnp.dot(p, v, preferred_element_type=f32))
        ctx_rows.append(jnp.concatenate(heads, axis=-1))          # (T, H)
    ctx = jnp.concatenate(ctx_rows, axis=0)                       # (BT, H)

    # --- single fused output projection across all heads.
    out = jnp.dot(ctx, wo_ref[...], preferred_element_type=f32) + bo_ref[...]  # (BT, H)
    o_ref[...] = out.reshape(block_b, T, H)
    # TODO(synk): for very large T, tile the (T,T) filter matmul and attention
    # over a T grid axis (v7x has only 64 MiB VMEM) instead of holding the full
    # filter / score matrices resident.


def init_params(key, input_dim, hidden_dim, num_heads):
    H = hidden_dim
    shapes = dict(
        w1h=(input_dim, H), b1h=(1, H), w2h=(H, H), b2h=(1, H),
        w1l=(input_dim, H), b1l=(1, H), w2l=(H, H), b2l=(1, H),
        wf_hi_t=(2, H), wf_lo_t=(2, H), bf=(1, 2),
        wqkv=(H, 3 * H), bqkv=(1, 3 * H),
        wo=(H, H), bo=(1, H),
    )
    keys = jax.random.split(key, len(shapes))
    return {name: (0.1 * jax.random.normal(k, shape)).astype(jnp.float32)
            for (name, shape), k in zip(shapes.items(), keys)}


def _pick_block_b(B, max_block=8):
    """Largest block size <= max_block that divides B (avoids partial blocks)."""
    bb = min(B, max_block)
    while B % bb:
        bb -= 1
    return bb


def traj_forward(x, params, cutoff_frequency, sampling_rate, num_heads=4, block_b=None):
    B, T, D = x.shape
    H = params["w2h"].shape[0]
    hd = H // num_heads
    if block_b is None:
        block_b = _pick_block_b(B)

    # Glue: real TxT low-pass filter matrix with exact FFT semantics
    # (Re(IFFT diag(mask) FFT)).  High-pass is derived in-kernel as x - low.
    freqs = jnp.fft.fftfreq(T, d=1.0 / sampling_rate)
    low_mask = (jnp.abs(freqs) <= cutoff_frequency).astype(jnp.complex64)
    F = jnp.fft.fft(jnp.eye(T, dtype=jnp.complex64), axis=0)
    wlow = jnp.real(jnp.fft.ifft(low_mask[:, None] * F, axis=0)).astype(jnp.float32)

    ordered = [params[n] for n in PARAM_ORDER]
    operands = [x, wlow] + ordered

    def rep_spec(a):
        n = a.ndim
        return pl.BlockSpec(a.shape, lambda b, _n=n: (0,) * _n)

    in_specs = ([pl.BlockSpec((block_b, T, D), lambda b: (b, 0, 0))]
                + [rep_spec(a) for a in operands[1:]])
    out_spec = pl.BlockSpec((block_b, T, H), lambda b: (b, 0, 0))

    kernel = functools.partial(_traj_kernel, num_heads=num_heads, head_dim=hd,
                               hidden_dim=H, block_b=block_b, seq_len=T)
    return pl.pallas_call(
        kernel,
        out_shape=jax.ShapeDtypeStruct((B, T, H), jnp.float32),
        grid_spec=pltpu.PrefetchScalarGridSpec(
            num_scalar_prefetch=0,
            grid=(B // block_b,),
            in_specs=in_specs,
            out_specs=out_spec,
        ),
        compiler_params=pltpu.CompilerParams(
            dimension_semantics=("parallel",),
            vmem_limit_bytes=32 * 1024 * 1024),
    )(*operands)


def reference_forward(x, params, cutoff_frequency, sampling_rate, num_heads=4):
    """Pure-JAX mirror of the PyTorch forward (for validation, high precision)."""
    B, T, D = x.shape
    H = params["w2h"].shape[0]
    hd = H // num_heads
    hi = jax.lax.Precision.HIGHEST

    freqs = jnp.fft.fftfreq(T, d=1.0 / sampling_rate)
    lm = jnp.abs(freqs) <= cutoff_frequency
    X = jnp.fft.fft(x, axis=1)
    low = jnp.real(jnp.fft.ifft(X * lm[None, :, None], axis=1)).astype(jnp.float32)
    high = jnp.real(jnp.fft.ifft(X * (~lm)[None, :, None], axis=1)).astype(jnp.float32)

    def mlp(z, w1, b1, w2, b2):
        h = jnp.maximum(jnp.einsum('btd,dh->bth', z, w1, precision=hi) + b1, 0.0)
        return jnp.einsum('bth,hk->btk', h, w2, precision=hi) + b2

    hf = mlp(high, params["w1h"], params["b1h"], params["w2h"], params["b2h"])
    lf = mlp(low, params["w1l"], params["b1l"], params["w2l"], params["b2l"])
    logits = (jnp.einsum('bth,gh->btg', hf, params["wf_hi_t"], precision=hi)
              + jnp.einsum('bth,gh->btg', lf, params["wf_lo_t"], precision=hi)
              + params["bf"])
    gates = jax.nn.sigmoid(logits)
    fused = gates[..., 0:1] * lf + gates[..., 1:2] * hf

    qkv = jnp.einsum('bth,hk->btk', fused, params["wqkv"], precision=hi) + params["bqkv"]
    q, k, v = qkv[..., :H], qkv[..., H:2 * H], qkv[..., 2 * H:]
    scale = 1.0 / math.sqrt(hd)
    ctx = []
    for h in range(num_heads):
        qh = q[..., h * hd:(h + 1) * hd] * scale
        kh = k[..., h * hd:(h + 1) * hd]
        vh = v[..., h * hd:(h + 1) * hd]
        s = jnp.einsum('bqd,bkd->bqk', qh, kh, precision=hi)
        p = jax.nn.softmax(s, axis=-1)
        ctx.append(jnp.einsum('bqk,bkd->bqd', p, vh, precision=hi))
    ctx = jnp.concatenate(ctx, axis=-1)
    return jnp.einsum('bth,hk->btk', ctx, params["wo"], precision=hi) + params["bo"]


if __name__ == "__main__":
    B, T, D, H, NH = 2, 8, 16, 32, 4        # batch, seq(time), input_dim, hidden_dim, heads
    cutoff_frequency, sampling_rate = 2.0, 10.0

    key = jax.random.PRNGKey(0)
    kx, kp = jax.random.split(key)
    x = jax.random.normal(kx, (B, T, D), dtype=jnp.float32)
    params = init_params(kp, D, H, NH)

    out = traj_forward(x, params, cutoff_frequency, sampling_rate, num_heads=NH)
    out = jax.block_until_ready(out)

    ref = reference_forward(x, params, cutoff_frequency, sampling_rate, num_heads=NH)
    ref = jax.block_until_ready(ref)

    assert out.shape == (B, T, H)
    # Kernel uses default MXU precision (and approx EUP reciprocal) rather than
    # Precision.HIGHEST, so tolerance is relaxed accordingly.
    if not jnp.allclose(out, ref, atol=3e-2, rtol=3e-2):
        raise AssertionError("Pallas kernel output mismatches JAX reference")
    print("KERNEL_OK")
</pallas_src>

<mosaic_0001>
module attributes {stable_mosaic.version = 11 : i64} {
  func.func @_traj_kernel(%arg0: i32, %arg1: memref<2x8x16xf32, #tpu.memory_space<vmem>>, %arg2: memref<8x8xf32, #tpu.memory_space<vmem>>, %arg3: memref<16x32xf32, #tpu.memory_space<vmem>>, %arg4: memref<1x32xf32, #tpu.memory_space<vmem>>, %arg5: memref<32x32xf32, #tpu.memory_space<vmem>>, %arg6: memref<1x32xf32, #tpu.memory_space<vmem>>, %arg7: memref<16x32xf32, #tpu.memory_space<vmem>>, %arg8: memref<1x32xf32, #tpu.memory_space<vmem>>, %arg9: memref<32x32xf32, #tpu.memory_space<vmem>>, %arg10: memref<1x32xf32, #tpu.memory_space<vmem>>, %arg11: memref<2x32xf32, #tpu.memory_space<vmem>>, %arg12: memref<2x32xf32, #tpu.memory_space<vmem>>, %arg13: memref<1x2xf32, #tpu.memory_space<vmem>>, %arg14: memref<32x96xf32, #tpu.memory_space<vmem>>, %arg15: memref<1x96xf32, #tpu.memory_space<vmem>>, %arg16: memref<32x32xf32, #tpu.memory_space<vmem>>, %arg17: memref<1x32xf32, #tpu.memory_space<vmem>>, %arg18: memref<2x8x32xf32, #tpu.memory_space<vmem>>) attributes {dimension_semantics = [#tpu.dimension_semantics<parallel>], iteration_bounds = array<i64: 1>, scalar_prefetch = 0 : i64, scratch_operands = 0 : i64, tpu.core_type = #tpu.core_type<tc>, window_params = [{transform_indices = @transform_0, window_bounds = array<i64: 2, 8, 16>}, {pipeline_mode = #tpu.pipeline_mode<synchronous>, transform_indices = @transform_1, window_bounds = array<i64: 8, 8>}, {pipeline_mode = #tpu.pipeline_mode<synchronous>, transform_indices = @transform_2, window_bounds = array<i64: 16, 32>}, {pipeline_mode = #tpu.pipeline_mode<synchronous>, transform_indices = @transform_3, window_bounds = array<i64: 1, 32>}, {pipeline_mode = #tpu.pipeline_mode<synchronous>, transform_indices = @transform_4, window_bounds = array<i64: 32, 32>}, {pipeline_mode = #tpu.pipeline_mode<synchronous>, transform_indices = @transform_5, window_bounds = array<i64: 1, 32>}, {pipeline_mode = #tpu.pipeline_mode<synchronous>, transform_indices = @transform_6, window_bounds = array<i64: 16, 32>}, {pipeline_mode = #tpu.pipeline_mode<synchronous>, transform_indices = @transform_7, window_bounds = array<i64: 1, 32>}, {pipeline_mode = #tpu.pipeline_mode<synchronous>, transform_indices = @transform_8, window_bounds = array<i64: 32, 32>}, {pipeline_mode = #tpu.pipeline_mode<synchronous>, transform_indices = @transform_9, window_bounds = array<i64: 1, 32>}, {pipeline_mode = #tpu.pipeline_mode<synchronous>, transform_indices = @transform_10, window_bounds = array<i64: 2, 32>}, {pipeline_mode = #tpu.pipeline_mode<synchronous>, transform_indices = @transform_11, window_bounds = array<i64: 2, 32>}, {pipeline_mode = #tpu.pipeline_mode<synchronous>, transform_indices = @transform_12, window_bounds = array<i64: 1, 2>}, {pipeline_mode = #tpu.pipeline_mode<synchronous>, transform_indices = @transform_13, window_bounds = array<i64: 32, 96>}, {pipeline_mode = #tpu.pipeline_mode<synchronous>, transform_indices = @transform_14, window_bounds = array<i64: 1, 96>}, {pipeline_mode = #tpu.pipeline_mode<synchronous>, transform_indices = @transform_15, window_bounds = array<i64: 32, 32>}, {pipeline_mode = #tpu.pipeline_mode<synchronous>, transform_indices = @transform_16, window_bounds = array<i64: 1, 32>}, {transform_indices = @transform_17, window_bounds = array<i64: 2, 8, 32>}]} {
    %c0 = arith.constant 0 : index
    %c0_0 = arith.constant 0 : index
    %c0_1 = arith.constant 0 : index
    %0 = vector.load %arg1[%c0, %c0_0, %c0_1] : memref<2x8x16xf32, #tpu.memory_space<vmem>>, vector<2x8x16xf32>
    %c0_2 = arith.constant 0 : index
    %c0_3 = arith.constant 0 : index
    %1 = vector.load %arg2[%c0_2, %c0_3] : memref<8x8xf32, #tpu.memory_space<vmem>>, vector<8x8xf32>
    %2 = vector.extract_strided_slice %0 {offsets = [0, 0, 0], sizes = [1, 8, 16], strides = [1, 1, 1]} : vector<2x8x16xf32> to vector<1x8x16xf32>
    %3 = vector.shape_cast %2 : vector<1x8x16xf32> to vector<8x16xf32>
    %cst = arith.constant dense<0.000000e+00> : vector<8x16xf32>
    %4 = tpu.matmul %1, %3, %cst {dimension_numbers = #tpu.dot_dimension_numbers<[1], [0], [0], [1], [0, 0, 1, 1], [], []>} : vector<8x8xf32>, vector<8x16xf32>, vector<8x16xf32> -> vector<8x16xf32>
    %5 = vector.extract_strided_slice %0 {offsets = [1, 0, 0], sizes = [1, 8, 16], strides = [1, 1, 1]} : vector<2x8x16xf32> to vector<1x8x16xf32>
    %6 = vector.shape_cast %5 : vector<1x8x16xf32> to vector<8x16xf32>
    %cst_4 = arith.constant dense<0.000000e+00> : vector<8x16xf32>
    %7 = tpu.matmul %1, %6, %cst_4 {dimension_numbers = #tpu.dot_dimension_numbers<[1], [0], [0], [1], [0, 0, 1, 1], [], []>} : vector<8x8xf32>, vector<8x16xf32>, vector<8x16xf32> -> vector<8x16xf32>
    %8 = tpu.concatenate %4, %7 in 0 : vector<8x16xf32>, vector<8x16xf32> -> vector<16x16xf32>
    %9 = vector.shape_cast %0 : vector<2x8x16xf32> to vector<16x16xf32>
    %10 = arith.subf %9, %8 : vector<16x16xf32>
    %c0_5 = arith.constant 0 : index
    %c0_6 = arith.constant 0 : index
    %11 = vector.load %arg3[%c0_5, %c0_6] : memref<16x32xf32, #tpu.memory_space<vmem>>, vector<16x32xf32>
    %c0_7 = arith.constant 0 : index
    %c0_8 = arith.constant 0 : index
    %12 = vector.load %arg4[%c0_7, %c0_8] : memref<1x32xf32, #tpu.memory_space<vmem>>, vector<1x32xf32>
    %c0_9 = arith.constant 0 : index
    %c0_10 = arith.constant 0 : index
    %13 = vector.load %arg5[%c0_9, %c0_10] : memref<32x32xf32, #tpu.memory_space<vmem>>, vector<32x32xf32>
    %c0_11 = arith.constant 0 : index
    %c0_12 = arith.constant 0 : index
    %14 = vector.load %arg6[%c0_11, %c0_12] : memref<1x32xf32, #tpu.memory_space<vmem>>, vector<1x32xf32>
    %cst_13 = arith.constant dense<0.000000e+00> : vector<16x32xf32>
    %15 = tpu.matmul %10, %11, %cst_13 {dimension_numbers = #tpu.dot_dimension_numbers<[1], [0], [0], [1], [0, 0, 1, 1], [], []>} : vector<16x16xf32>, vector<16x32xf32>, vector<16x32xf32> -> vector<16x32xf32>
    %16 = vector.broadcast %12 : vector<1x32xf32> to vector<16x32xf32>
    %17 = arith.addf %15, %16 : vector<16x32xf32>
    %cst_14 = arith.constant 0.000000e+00 : f32
    %18 = vector.broadcast %cst_14 : f32 to vector<16x32xf32>
    %19 = arith.maximumf %17, %18 : vector<16x32xf32>
    %cst_15 = arith.constant dense<0.000000e+00> : vector<16x32xf32>
    %20 = tpu.matmul %19, %13, %cst_15 {dimension_numbers = #tpu.dot_dimension_numbers<[1], [0], [0], [1], [0, 0, 1, 1], [], []>} : vector<16x32xf32>, vector<32x32xf32>, vector<16x32xf32> -> vector<16x32xf32>
    %21 = vector.broadcast %14 : vector<1x32xf32> to vector<16x32xf32>
    %22 = arith.addf %20, %21 : vector<16x32xf32>
    %c0_16 = arith.constant 0 : index
    %c0_17 = arith.constant 0 : index
    %23 = vector.load %arg7[%c0_16, %c0_17] : memref<16x32xf32, #tpu.memory_space<vmem>>, vector<16x32xf32>
    %c0_18 = arith.constant 0 : index
    %c0_19 = arith.constant 0 : index
    %24 = vector.load %arg8[%c0_18, %c0_19] : memref<1x32xf32, #tpu.memory_space<vmem>>, vector<1x32xf32>
    %c0_20 = arith.constant 0 : index
    %c0_21 = arith.constant 0 : index
    %25 = vector.load %arg9[%c0_20, %c0_21] : memref<32x32xf32, #tpu.memory_space<vmem>>, vector<32x32xf32>
    %c0_22 = arith.constant 0 : index
    %c0_23 = arith.constant 0 : index
    %26 = vector.load %arg10[%c0_22, %c0_23] : memref<1x32xf32, #tpu.memory_space<vmem>>, vector<1x32xf32>
    %cst_24 = arith.constant dense<0.000000e+00> : vector<16x32xf32>
    %27 = tpu.matmul %8, %23, %cst_24 {dimension_numbers = #tpu.dot_dimension_numbers<[1], [0], [0], [1], [0, 0, 1, 1], [], []>} : vector<16x16xf32>, vector<16x32xf32>, vector<16x32xf32> -> vector<16x32xf32>
    %28 = vector.broadcast %24 : vector<1x32xf32> to vector<16x32xf32>
    %29 = arith.addf %27, %28 : vector<16x32xf32>
    %cst_25 = arith.constant 0.000000e+00 : f32
    %30 = vector.broadcast %cst_25 : f32 to vector<16x32xf32>
    %31 = arith.maximumf %29, %30 : vector<16x32xf32>
    %cst_26 = arith.constant dense<0.000000e+00> : vector<16x32xf32>
    %32 = tpu.matmul %31, %25, %cst_26 {dimension_numbers = #tpu.dot_dimension_numbers<[1], [0], [0], [1], [0, 0, 1, 1], [], []>} : vector<16x32xf32>, vector<32x32xf32>, vector<16x32xf32> -> vector<16x32xf32>
    %33 = vector.broadcast %26 : vector<1x32xf32> to vector<16x32xf32>
    %34 = arith.addf %32, %33 : vector<16x32xf32>
    %c0_27 = arith.constant 0 : index
    %c0_28 = arith.constant 0 : index
    %35 = vector.load %arg11[%c0_27, %c0_28] : memref<2x32xf32, #tpu.memory_space<vmem>>, vector<2x32xf32>
    %c0_29 = arith.constant 0 : index
    %c0_30 = arith.constant 0 : index
    %36 = vector.load %arg12[%c0_29, %c0_30] : memref<2x32xf32, #tpu.memory_space<vmem>>, vector<2x32xf32>
    %c0_31 = arith.constant 0 : index
    %c0_32 = arith.constant 0 : index
    %37 = vector.load %arg13[%c0_31, %c0_32] : memref<1x2xf32, #tpu.memory_space<vmem>>, vector<1x2xf32>
    %38 = vector.extract_strided_slice %35 {offsets = [0, 0], sizes = [1, 32], strides = [1, 1]} : vector<2x32xf32> to vector<1x32xf32>
    %39 = vector.broadcast %38 : vector<1x32xf32> to vector<16x32xf32>
    %40 = arith.mulf %22, %39 : vector<16x32xf32>
    %cst_33 = arith.constant dense<0.000000e+00> : vector<16xf32>
    %41 = vector.multi_reduction <add>, %40, %cst_33 [1] : vector<16x32xf32> to vector<16xf32>
    %42 = vector.shape_cast %41 : vector<16xf32> to vector<16x1xf32>
    %43 = vector.extract_strided_slice %36 {offsets = [0, 0], sizes = [1, 32], strides = [1, 1]} : vector<2x32xf32> to vector<1x32xf32>
    %44 = vector.broadcast %43 : vector<1x32xf32> to vector<16x32xf32>
    %45 = arith.mulf %34, %44 : vector<16x32xf32>
    %cst_34 = arith.constant dense<0.000000e+00> : vector<16xf32>
    %46 = vector.multi_reduction <add>, %45, %cst_34 [1] : vector<16x32xf32> to vector<16xf32>
    %47 = vector.shape_cast %46 : vector<16xf32> to vector<16x1xf32>
    %48 = arith.addf %42, %47 : vector<16x1xf32>
    %49 = vector.extract_strided_slice %37 {offsets = [0, 0], sizes = [1, 1], strides = [1, 1]} : vector<1x2xf32> to vector<1x1xf32>
    %50 = vector.broadcast %49 : vector<1x1xf32> to vector<16x1xf32>
    %51 = arith.addf %48, %50 : vector<16x1xf32>
    %52 = vector.extract_strided_slice %35 {offsets = [1, 0], sizes = [1, 32], strides = [1, 1]} : vector<2x32xf32> to vector<1x32xf32>
    %53 = vector.broadcast %52 : vector<1x32xf32> to vector<16x32xf32>
    %54 = arith.mulf %22, %53 : vector<16x32xf32>
    %cst_35 = arith.constant dense<0.000000e+00> : vector<16xf32>
    %55 = vector.multi_reduction <add>, %54, %cst_35 [1] : vector<16x32xf32> to vector<16xf32>
    %56 = vector.shape_cast %55 : vector<16xf32> to vector<16x1xf32>
    %57 = vector.extract_strided_slice %36 {offsets = [1, 0], sizes = [1, 32], strides = [1, 1]} : vector<2x32xf32> to vector<1x32xf32>
    %58 = vector.broadcast %57 : vector<1x32xf32> to vector<16x32xf32>
    %59 = arith.mulf %34, %58 : vector<16x32xf32>
    %cst_36 = arith.constant dense<0.000000e+00> : vector<16xf32>
    %60 = vector.multi_reduction <add>, %59, %cst_36 [1] : vector<16x32xf32> to vector<16xf32>
    %61 = vector.shape_cast %60 : vector<16xf32> to vector<16x1xf32>
    %62 = arith.addf %56, %61 : vector<16x1xf32>
    %63 = vector.extract_strided_slice %37 {offsets = [0, 1], sizes = [1, 1], strides = [1, 1]} : vector<1x2xf32> to vector<1x1xf32>
    %64 = vector.broadcast %63 : vector<1x1xf32> to vector<16x1xf32>
    %65 = arith.addf %62, %64 : vector<16x1xf32>
    %66 = arith.negf %51 : vector<16x1xf32>
    %67 = math.exp %66 : vector<16x1xf32>
    %cst_37 = arith.constant 1.000000e+00 : f32
    %68 = vector.broadcast %cst_37 : f32 to vector<16x1xf32>
    %69 = arith.addf %68, %67 : vector<16x1xf32>
    %70 = arith.divf %68, %69 : vector<16x1xf32>
    %71 = arith.negf %65 : vector<16x1xf32>
    %72 = math.exp %71 : vector<16x1xf32>
    %cst_38 = arith.constant 1.000000e+00 : f32
    %73 = vector.broadcast %cst_38 : f32 to vector<16x1xf32>
    %74 = arith.addf %73, %72 : vector<16x1xf32>
    %75 = arith.divf %73, %74 : vector<16x1xf32>
    %76 = vector.broadcast %70 : vector<16x1xf32> to vector<16x32xf32>
    %77 = arith.mulf %76, %34 : vector<16x32xf32>
    %78 = vector.broadcast %75 : vector<16x1xf32> to vector<16x32xf32>
    %79 = arith.mulf %78, %22 : vector<16x32xf32>
    %80 = arith.addf %77, %79 : vector<16x32xf32>
    %c0_39 = arith.constant 0 : index
    %c0_40 = arith.constant 0 : index
    %81 = vector.load %arg14[%c0_39, %c0_40] : memref<32x96xf32, #tpu.memory_space<vmem>>, vector<32x96xf32>
    %cst_41 = arith.constant dense<0.000000e+00> : vector<16x96xf32>
    %82 = tpu.matmul %80, %81, %cst_41 {dimension_numbers = #tpu.dot_dimension_numbers<[1], [0], [0], [1], [0, 0, 1, 1], [], []>} : vector<16x32xf32>, vector<32x96xf32>, vector<16x96xf32> -> vector<16x96xf32>
    %c0_42 = arith.constant 0 : index
    %c0_43 = arith.constant 0 : index
    %83 = vector.load %arg15[%c0_42, %c0_43] : memref<1x96xf32, #tpu.memory_space<vmem>>, vector<1x96xf32>
    %84 = vector.broadcast %83 : vector<1x96xf32> to vector<16x96xf32>
    %85 = arith.addf %82, %84 : vector<16x96xf32>
    %86 = vector.shape_cast %85 : vector<16x96xf32> to vector<2x8x96xf32>
    %87 = vector.extract_strided_slice %86 {offsets = [0, 0, 0], sizes = [1, 8, 8], strides = [1, 1, 1]} : vector<2x8x96xf32> to vector<1x8x8xf32>
    %88 = vector.shape_cast %87 : vector<1x8x8xf32> to vector<8x8xf32>
    %cst_44 = arith.constant 0.353553385 : f32
    %89 = vector.broadcast %cst_44 : f32 to vector<8x8xf32>
    %90 = arith.mulf %88, %89 : vector<8x8xf32>
    %91 = vector.extract_strided_slice %86 {offsets = [0, 0, 32], sizes = [1, 8, 8], strides = [1, 1, 1]} : vector<2x8x96xf32> to vector<1x8x8xf32>
    %92 = vector.shape_cast %91 : vector<1x8x8xf32> to vector<8x8xf32>
    %93 = vector.extract_strided_slice %86 {offsets = [0, 0, 64], sizes = [1, 8, 8], strides = [1, 1, 1]} : vector<2x8x96xf32> to vector<1x8x8xf32>
    %94 = vector.shape_cast %93 : vector<1x8x8xf32> to vector<8x8xf32>
    %95 = tpu.transpose %92, [1, 0] : vector<8x8xf32> -> vector<8x8xf32>
    %cst_45 = arith.constant dense<0.000000e+00> : vector<8x8xf32>
    %96 = tpu.matmul %90, %95, %cst_45 {dimension_numbers = #tpu.dot_dimension_numbers<[1], [0], [0], [1], [0, 0, 1, 1], [], []>} : vector<8x8xf32>, vector<8x8xf32>, vector<8x8xf32> -> vector<8x8xf32>
    %cst_46 = arith.constant dense<0xFF800000> : vector<8xf32>
    %97 = vector.multi_reduction <maximumf>, %96, %cst_46 [1] : vector<8x8xf32> to vector<8xf32>
    %98 = vector.shape_cast %97 : vector<8xf32> to vector<8x1xf32>
    %99 = vector.broadcast %98 : vector<8x1xf32> to vector<8x8xf32>
    %100 = arith.subf %96, %99 : vector<8x8xf32>
    %101 = math.exp %100 : vector<8x8xf32>
    %cst_47 = arith.constant dense<0.000000e+00> : vector<8xf32>
    %102 = vector.multi_reduction <add>, %101, %cst_47 [1] : vector<8x8xf32> to vector<8xf32>
    %103 = vector.shape_cast %102 : vector<8xf32> to vector<8x1xf32>
    %104 = tpu.reciprocal %103 {approx = true} : vector<8x1xf32> -> vector<8x1xf32>
    %105 = vector.broadcast %104 : vector<8x1xf32> to vector<8x8xf32>
    %106 = arith.mulf %101, %105 : vector<8x8xf32>
    %cst_48 = arith.constant dense<0.000000e+00> : vector<8x8xf32>
    %107 = tpu.matmul %106, %94, %cst_48 {dimension_numbers = #tpu.dot_dimension_numbers<[1], [0], [0], [1], [0, 0, 1, 1], [], []>} : vector<8x8xf32>, vector<8x8xf32>, vector<8x8xf32> -> vector<8x8xf32>
    %108 = vector.extract_strided_slice %86 {offsets = [0, 0, 8], sizes = [1, 8, 8], strides = [1, 1, 1]} : vector<2x8x96xf32> to vector<1x8x8xf32>
    %109 = vector.shape_cast %108 : vector<1x8x8xf32> to vector<8x8xf32>
    %cst_49 = arith.constant 0.353553385 : f32
    %110 = vector.broadcast %cst_49 : f32 to vector<8x8xf32>
    %111 = arith.mulf %109, %110 : vector<8x8xf32>
    %112 = vector.extract_strided_slice %86 {offsets = [0, 0, 40], sizes = [1, 8, 8], strides = [1, 1, 1]} : vector<2x8x96xf32> to vector<1x8x8xf32>
    %113 = vector.shape_cast %112 : vector<1x8x8xf32> to vector<8x8xf32>
    %114 = vector.extract_strided_slice %86 {offsets = [0, 0, 72], sizes = [1, 8, 8], strides = [1, 1, 1]} : vector<2x8x96xf32> to vector<1x8x8xf32>
    %115 = vector.shape_cast %114 : vector<1x8x8xf32> to vector<8x8xf32>
    %116 = tpu.transpose %113, [1, 0] : vector<8x8xf32> -> vector<8x8xf32>
    %cst_50 = arith.constant dense<0.000000e+00> : vector<8x8xf32>
    %117 = tpu.matmul %111, %116, %cst_50 {dimension_numbers = #tpu.dot_dimension_numbers<[1], [0], [0], [1], [0, 0, 1, 1], [], []>} : vector<8x8xf32>, vector<8x8xf32>, vector<8x8xf32> -> vector<8x8xf32>
    %cst_51 = arith.constant dense<0xFF800000> : vector<8xf32>
    %118 = vector.multi_reduction <maximumf>, %117, %cst_51 [1] : vector<8x8xf32> to vector<8xf32>
    %119 = vector.shape_cast %118 : vector<8xf32> to vector<8x1xf32>
    %120 = vector.broadcast %119 : vector<8x1xf32> to vector<8x8xf32>
    %121 = arith.subf %117, %120 : vector<8x8xf32>
    %122 = math.exp %121 : vector<8x8xf32>
    %cst_52 = arith.constant dense<0.000000e+00> : vector<8xf32>
    %123 = vector.multi_reduction <add>, %122, %cst_52 [1] : vector<8x8xf32> to vector<8xf32>
    %124 = vector.shape_cast %123 : vector<8xf32> to vector<8x1xf32>
    %125 = tpu.reciprocal %124 {approx = true} : vector<8x1xf32> -> vector<8x1xf32>
    %126 = vector.broadcast %125 : vector<8x1xf32> to vector<8x8xf32>
    %127 = arith.mulf %122, %126 : vector<8x8xf32>
    %cst_53 = arith.constant dense<0.000000e+00> : vector<8x8xf32>
    %128 = tpu.matmul %127, %115, %cst_53 {dimension_numbers = #tpu.dot_dimension_numbers<[1], [0], [0], [1], [0, 0, 1, 1], [], []>} : vector<8x8xf32>, vector<8x8xf32>, vector<8x8xf32> -> vector<8x8xf32>
    %129 = vector.extract_strided_slice %86 {offsets = [0, 0, 16], sizes = [1, 8, 8], strides = [1, 1, 1]} : vector<2x8x96xf32> to vector<1x8x8xf32>
    %130 = vector.shape_cast %129 : vector<1x8x8xf32> to vector<8x8xf32>
    %cst_54 = arith.constant 0.353553385 : f32
    %131 = vector.broadcast %cst_54 : f32 to vector<8x8xf32>
    %132 = arith.mulf %130, %131 : vector<8x8xf32>
    %133 = vector.extract_strided_slice %86 {offsets = [0, 0, 48], sizes = [1, 8, 8], strides = [1, 1, 1]} : vector<2x8x96xf32> to vector<1x8x8xf32>
    %134 = vector.shape_cast %133 : vector<1x8x8xf32> to vector<8x8xf32>
    %135 = vector.extract_strided_slice %86 {offsets = [0, 0, 80], sizes = [1, 8, 8], strides = [1, 1, 1]} : vector<2x8x96xf32> to vector<1x8x8xf32>
    %136 = vector.shape_cast %135 : vector<1x8x8xf32> to vector<8x8xf32>
    %137 = tpu.transpose %134, [1, 0] : vector<8x8xf32> -> vector<8x8xf32>
    %cst_55 = arith.constant dense<0.000000e+00> : vector<8x8xf32>
    %138 = tpu.matmul %132, %137, %cst_55 {dimension_numbers = #tpu.dot_dimension_numbers<[1], [0], [0], [1], [0, 0, 1, 1], [], []>} : vector<8x8xf32>, vector<8x8xf32>, vector<8x8xf32> -> vector<8x8xf32>
    %cst_56 = arith.constant dense<0xFF800000> : vector<8xf32>
    %139 = vector.multi_reduction <maximumf>, %138, %cst_56 [1] : vector<8x8xf32> to vector<8xf32>
    %140 = vector.shape_cast %139 : vector<8xf32> to vector<8x1xf32>
    %141 = vector.broadcast %140 : vector<8x1xf32> to vector<8x8xf32>
    %142 = arith.subf %138, %141 : vector<8x8xf32>
    %143 = math.exp %142 : vector<8x8xf32>
    %cst_57 = arith.constant dense<0.000000e+00> : vector<8xf32>
    %144 = vector.multi_reduction <add>, %143, %cst_57 [1] : vector<8x8xf32> to vector<8xf32>
    %145 = vector.shape_cast %144 : vector<8xf32> to vector<8x1xf32>
    %146 = tpu.reciprocal %145 {approx = true} : vector<8x1xf32> -> vector<8x1xf32>
    %147 = vector.broadcast %146 : vector<8x1xf32> to vector<8x8xf32>
    %148 = arith.mulf %143, %147 : vector<8x8xf32>
    %cst_58 = arith.constant dense<0.000000e+00> : vector<8x8xf32>
    %149 = tpu.matmul %148, %136, %cst_58 {dimension_numbers = #tpu.dot_dimension_numbers<[1], [0], [0], [1], [0, 0, 1, 1], [], []>} : vector<8x8xf32>, vector<8x8xf32>, vector<8x8xf32> -> vector<8x8xf32>
    %150 = vector.extract_strided_slice %86 {offsets = [0, 0, 24], sizes = [1, 8, 8], strides = [1, 1, 1]} : vector<2x8x96xf32> to vector<1x8x8xf32>
    %151 = vector.shape_cast %150 : vector<1x8x8xf32> to vector<8x8xf32>
    %cst_59 = arith.constant 0.353553385 : f32
    %152 = vector.broadcast %cst_59 : f32 to vector<8x8xf32>
    %153 = arith.mulf %151, %152 : vector<8x8xf32>
    %154 = vector.extract_strided_slice %86 {offsets = [0, 0, 56], sizes = [1, 8, 8], strides = [1, 1, 1]} : vector<2x8x96xf32> to vector<1x8x8xf32>
    %155 = vector.shape_cast %154 : vector<1x8x8xf32> to vector<8x8xf32>
    %156 = vector.extract_strided_slice %86 {offsets = [0, 0, 88], sizes = [1, 8, 8], strides = [1, 1, 1]} : vector<2x8x96xf32> to vector<1x8x8xf32>
    %157 = vector.shape_cast %156 : vector<1x8x8xf32> to vector<8x8xf32>
    %158 = tpu.transpose %155, [1, 0] : vector<8x8xf32> -> vector<8x8xf32>
    %cst_60 = arith.constant dense<0.000000e+00> : vector<8x8xf32>
    %159 = tpu.matmul %153, %158, %cst_60 {dimension_numbers = #tpu.dot_dimension_numbers<[1], [0], [0], [1], [0, 0, 1, 1], [], []>} : vector<8x8xf32>, vector<8x8xf32>, vector<8x8xf32> -> vector<8x8xf32>
    %cst_61 = arith.constant dense<0xFF800000> : vector<8xf32>
    %160 = vector.multi_reduction <maximumf>, %159, %cst_61 [1] : vector<8x8xf32> to vector<8xf32>
    %161 = vector.shape_cast %160 : vector<8xf32> to vector<8x1xf32>
    %162 = vector.broadcast %161 : vector<8x1xf32> to vector<8x8xf32>
    %163 = arith.subf %159, %162 : vector<8x8xf32>
    %164 = math.exp %163 : vector<8x8xf32>
    %cst_62 = arith.constant dense<0.000000e+00> : vector<8xf32>
    %165 = vector.multi_reduction <add>, %164, %cst_62 [1] : vector<8x8xf32> to vector<8xf32>
    %166 = vector.shape_cast %165 : vector<8xf32> to vector<8x1xf32>
    %167 = tpu.reciprocal %166 {approx = true} : vector<8x1xf32> -> vector<8x1xf32>
    %168 = vector.broadcast %167 : vector<8x1xf32> to vector<8x8xf32>
    %169 = arith.mulf %164, %168 : vector<8x8xf32>
    %cst_63 = arith.constant dense<0.000000e+00> : vector<8x8xf32>
    %170 = tpu.matmul %169, %157, %cst_63 {dimension_numbers = #tpu.dot_dimension_numbers<[1], [0], [0], [1], [0, 0, 1, 1], [], []>} : vector<8x8xf32>, vector<8x8xf32>, vector<8x8xf32> -> vector<8x8xf32>
    %171 = tpu.concatenate %107, %128, %149, %170 in 1 : vector<8x8xf32>, vector<8x8xf32>, vector<8x8xf32>, vector<8x8xf32> -> vector<8x32xf32>
    %172 = vector.extract_strided_slice %86 {offsets = [1, 0, 0], sizes = [1, 8, 8], strides = [1, 1, 1]} : vector<2x8x96xf32> to vector<1x8x8xf32>
    %173 = vector.shape_cast %172 : vector<1x8x8xf32> to vector<8x8xf32>
    %cst_64 = arith.constant 0.353553385 : f32
    %174 = vector.broadcast %cst_64 : f32 to vector<8x8xf32>
    %175 = arith.mulf %173, %174 : vector<8x8xf32>
    %176 = vector.extract_strided_slice %86 {offsets = [1, 0, 32], sizes = [1, 8, 8], strides = [1, 1, 1]} : vector<2x8x96xf32> to vector<1x8x8xf32>
    %177 = vector.shape_cast %176 : vector<1x8x8xf32> to vector<8x8xf32>
    %178 = vector.extract_strided_slice %86 {offsets = [1, 0, 64], sizes = [1, 8, 8], strides = [1, 1, 1]} : vector<2x8x96xf32> to vector<1x8x8xf32>
    %179 = vector.shape_cast %178 : vector<1x8x8xf32> to vector<8x8xf32>
    %180 = tpu.transpose %177, [1, 0] : vector<8x8xf32> -> vector<8x8xf32>
    %cst_65 = arith.constant dense<0.000000e+00> : vector<8x8xf32>
    %181 = tpu.matmul %175, %180, %cst_65 {dimension_numbers = #tpu.dot_dimension_numbers<[1], [0], [0], [1], [0, 0, 1, 1], [], []>} : vector<8x8xf32>, vector<8x8xf32>, vector<8x8xf32> -> vector<8x8xf32>
    %cst_66 = arith.constant dense<0xFF800000> : vector<8xf32>
    %182 = vector.multi_reduction <maximumf>, %181, %cst_66 [1] : vector<8x8xf32> to vector<8xf32>
    %183 = vector.shape_cast %182 : vector<8xf32> to vector<8x1xf32>
    %184 = vector.broadcast %183 : vector<8x1xf32> to vector<8x8xf32>
    %185 = arith.subf %181, %184 : vector<8x8xf32>
    %186 = math.exp %185 : vector<8x8xf32>
    %cst_67 = arith.constant dense<0.000000e+00> : vector<8xf32>
    %187 = vector.multi_reduction <add>, %186, %cst_67 [1] : vector<8x8xf32> to vector<8xf32>
    %188 = vector.shape_cast %187 : vector<8xf32> to vector<8x1xf32>
    %189 = tpu.reciprocal %188 {approx = true} : vector<8x1xf32> -> vector<8x1xf32>
    %190 = vector.broadcast %189 : vector<8x1xf32> to vector<8x8xf32>
    %191 = arith.mulf %186, %190 : vector<8x8xf32>
    %cst_68 = arith.constant dense<0.000000e+00> : vector<8x8xf32>
    %192 = tpu.matmul %191, %179, %cst_68 {dimension_numbers = #tpu.dot_dimension_numbers<[1], [0], [0], [1], [0, 0, 1, 1], [], []>} : vector<8x8xf32>, vector<8x8xf32>, vector<8x8xf32> -> vector<8x8xf32>
    %193 = vector.extract_strided_slice %86 {offsets = [1, 0, 8], sizes = [1, 8, 8], strides = [1, 1, 1]} : vector<2x8x96xf32> to vector<1x8x8xf32>
    %194 = vector.shape_cast %193 : vector<1x8x8xf32> to vector<8x8xf32>
    %cst_69 = arith.constant 0.353553385 : f32
    %195 = vector.broadcast %cst_69 : f32 to vector<8x8xf32>
    %196 = arith.mulf %194, %195 : vector<8x8xf32>
    %197 = vector.extract_strided_slice %86 {offsets = [1, 0, 40], sizes = [1, 8, 8], strides = [1, 1, 1]} : vector<2x8x96xf32> to vector<1x8x8xf32>
    %198 = vector.shape_cast %197 : vector<1x8x8xf32> to vector<8x8xf32>
    %199 = vector.extract_strided_slice %86 {offsets = [1, 0, 72], sizes = [1, 8, 8], strides = [1, 1, 1]} : vector<2x8x96xf32> to vector<1x8x8xf32>
    %200 = vector.shape_cast %199 : vector<1x8x8xf32> to vector<8x8xf32>
    %201 = tpu.transpose %198, [1, 0] : vector<8x8xf32> -> vector<8x8xf32>
    %cst_70 = arith.constant dense<0.000000e+00> : vector<8x8xf32>
    %202 = tpu.matmul %196, %201, %cst_70 {dimension_numbers = #tpu.dot_dimension_numbers<[1], [0], [0], [1], [0, 0, 1, 1], [], []>} : vector<8x8xf32>, vector<8x8xf32>, vector<8x8xf32> -> vector<8x8xf32>
    %cst_71 = arith.constant dense<0xFF800000> : vector<8xf32>
    %203 = vector.multi_reduction <maximumf>, %202, %cst_71 [1] : vector<8x8xf32> to vector<8xf32>
    %204 = vector.shape_cast %203 : vector<8xf32> to vector<8x1xf32>
    %205 = vector.broadcast %204 : vector<8x1xf32> to vector<8x8xf32>
    %206 = arith.subf %202, %205 : vector<8x8xf32>
    %207 = math.exp %206 : vector<8x8xf32>
    %cst_72 = arith.constant dense<0.000000e+00> : vector<8xf32>
    %208 = vector.multi_reduction <add>, %207, %cst_72 [1] : vector<8x8xf32> to vector<8xf32>
    %209 = vector.shape_cast %208 : vector<8xf32> to vector<8x1xf32>
    %210 = tpu.reciprocal %209 {approx = true} : vector<8x1xf32> -> vector<8x1xf32>
    %211 = vector.broadcast %210 : vector<8x1xf32> to vector<8x8xf32>
    %212 = arith.mulf %207, %211 : vector<8x8xf32>
    %cst_73 = arith.constant dense<0.000000e+00> : vector<8x8xf32>
    %213 = tpu.matmul %212, %200, %cst_73 {dimension_numbers = #tpu.dot_dimension_numbers<[1], [0], [0], [1], [0, 0, 1, 1], [], []>} : vector<8x8xf32>, vector<8x8xf32>, vector<8x8xf32> -> vector<8x8xf32>
    %214 = vector.extract_strided_slice %86 {offsets = [1, 0, 16], sizes = [1, 8, 8], strides = [1, 1, 1]} : vector<2x8x96xf32> to vector<1x8x8xf32>
    %215 = vector.shape_cast %214 : vector<1x8x8xf32> to vector<8x8xf32>
    %cst_74 = arith.constant 0.353553385 : f32
    %216 = vector.broadcast %cst_74 : f32 to vector<8x8xf32>
    %217 = arith.mulf %215, %216 : vector<8x8xf32>
    %218 = vector.extract_strided_slice %86 {offsets = [1, 0, 48], sizes = [1, 8, 8], strides = [1, 1, 1]} : vector<2x8x96xf32> to vector<1x8x8xf32>
    %219 = vector.shape_cast %218 : vector<1x8x8xf32> to vector<8x8xf32>
    %220 = vector.extract_strided_slice %86 {offsets = [1, 0, 80], sizes = [1, 8, 8], strides = [1, 1, 1]} : vector<2x8x96xf32> to vector<1x8x8xf32>
    %221 = vector.shape_cast %220 : vector<1x8x8xf32> to vector<8x8xf32>
    %222 = tpu.transpose %219, [1, 0] : vector<8x8xf32> -> vector<8x8xf32>
    %cst_75 = arith.constant dense<0.000000e+00> : vector<8x8xf32>
    %223 = tpu.matmul %217, %222, %cst_75 {dimension_numbers = #tpu.dot_dimension_numbers<[1], [0], [0], [1], [0, 0, 1, 1], [], []>} : vector<8x8xf32>, vector<8x8xf32>, vector<8x8xf32> -> vector<8x8xf32>
    %cst_76 = arith.constant dense<0xFF800000> : vector<8xf32>
    %224 = vector.multi_reduction <maximumf>, %223, %cst_76 [1] : vector<8x8xf32> to vector<8xf32>
    %225 = vector.shape_cast %224 : vector<8xf32> to vector<8x1xf32>
    %226 = vector.broadcast %225 : vector<8x1xf32> to vector<8x8xf32>
    %227 = arith.subf %223, %226 : vector<8x8xf32>
    %228 = math.exp %227 : vector<8x8xf32>
    %cst_77 = arith.constant dense<0.000000e+00> : vector<8xf32>
    %229 = vector.multi_reduction <add>, %228, %cst_77 [1] : vector<8x8xf32> to vector<8xf32>
    %230 = vector.shape_cast %229 : vector<8xf32> to vector<8x1xf32>
    %231 = tpu.reciprocal %230 {approx = true} : vector<8x1xf32> -> vector<8x1xf32>
    %232 = vector.broadcast %231 : vector<8x1xf32> to vector<8x8xf32>
    %233 = arith.mulf %228, %232 : vector<8x8xf32>
    %cst_78 = arith.constant dense<0.000000e+00> : vector<8x8xf32>
    %234 = tpu.matmul %233, %221, %cst_78 {dimension_numbers = #tpu.dot_dimension_numbers<[1], [0], [0], [1], [0, 0, 1, 1], [], []>} : vector<8x8xf32>, vector<8x8xf32>, vector<8x8xf32> -> vector<8x8xf32>
    %235 = vector.extract_strided_slice %86 {offsets = [1, 0, 24], sizes = [1, 8, 8], strides = [1, 1, 1]} : vector<2x8x96xf32> to vector<1x8x8xf32>
    %236 = vector.shape_cast %235 : vector<1x8x8xf32> to vector<8x8xf32>
    %cst_79 = arith.constant 0.353553385 : f32
    %237 = vector.broadcast %cst_79 : f32 to vector<8x8xf32>
    %238 = arith.mulf %236, %237 : vector<8x8xf32>
    %239 = vector.extract_strided_slice %86 {offsets = [1, 0, 56], sizes = [1, 8, 8], strides = [1, 1, 1]} : vector<2x8x96xf32> to vector<1x8x8xf32>
    %240 = vector.shape_cast %239 : vector<1x8x8xf32> to vector<8x8xf32>
    %241 = vector.extract_strided_slice %86 {offsets = [1, 0, 88], sizes = [1, 8, 8], strides = [1, 1, 1]} : vector<2x8x96xf32> to vector<1x8x8xf32>
    %242 = vector.shape_cast %241 : vector<1x8x8xf32> to vector<8x8xf32>
    %243 = tpu.transpose %240, [1, 0] : vector<8x8xf32> -> vector<8x8xf32>
    %cst_80 = arith.constant dense<0.000000e+00> : vector<8x8xf32>
    %244 = tpu.matmul %238, %243, %cst_80 {dimension_numbers = #tpu.dot_dimension_numbers<[1], [0], [0], [1], [0, 0, 1, 1], [], []>} : vector<8x8xf32>, vector<8x8xf32>, vector<8x8xf32> -> vector<8x8xf32>
    %cst_81 = arith.constant dense<0xFF800000> : vector<8xf32>
    %245 = vector.multi_reduction <maximumf>, %244, %cst_81 [1] : vector<8x8xf32> to vector<8xf32>
    %246 = vector.shape_cast %245 : vector<8xf32> to vector<8x1xf32>
    %247 = vector.broadcast %246 : vector<8x1xf32> to vector<8x8xf32>
    %248 = arith.subf %244, %247 : vector<8x8xf32>
    %249 = math.exp %248 : vector<8x8xf32>
    %cst_82 = arith.constant dense<0.000000e+00> : vector<8xf32>
    %250 = vector.multi_reduction <add>, %249, %cst_82 [1] : vector<8x8xf32> to vector<8xf32>
    %251 = vector.shape_cast %250 : vector<8xf32> to vector<8x1xf32>
    %252 = tpu.reciprocal %251 {approx = true} : vector<8x1xf32> -> vector<8x1xf32>
    %253 = vector.broadcast %252 : vector<8x1xf32> to vector<8x8xf32>
    %254 = arith.mulf %249, %253 : vector<8x8xf32>
    %cst_83 = arith.constant dense<0.000000e+00> : vector<8x8xf32>
    %255 = tpu.matmul %254, %242, %cst_83 {dimension_numbers = #tpu.dot_dimension_numbers<[1], [0], [0], [1], [0, 0, 1, 1], [], []>} : vector<8x8xf32>, vector<8x8xf32>, vector<8x8xf32> -> vector<8x8xf32>
    %256 = tpu.concatenate %192, %213, %234, %255 in 1 : vector<8x8xf32>, vector<8x8xf32>, vector<8x8xf32>, vector<8x8xf32> -> vector<8x32xf32>
    %257 = tpu.concatenate %171, %256 in 0 : vector<8x32xf32>, vector<8x32xf32> -> vector<16x32xf32>
    %c0_84 = arith.constant 0 : index
    %c0_85 = arith.constant 0 : index
    %258 = vector.load %arg16[%c0_84, %c0_85] : memref<32x32xf32, #tpu.memory_space<vmem>>, vector<32x32xf32>
    %cst_86 = arith.constant dense<0.000000e+00> : vector<16x32xf32>
    %259 = tpu.matmul %257, %258, %cst_86 {dimension_numbers = #tpu.dot_dimension_numbers<[1], [0], [0], [1], [0, 0, 1, 1], [], []>} : vector<16x32xf32>, vector<32x32xf32>, vector<16x32xf32> -> vector<16x32xf32>
    %c0_87 = arith.constant 0 : index
    %c0_88 = arith.constant 0 : index
    %260 = vector.load %arg17[%c0_87, %c0_88] : memref<1x32xf32, #tpu.memory_space<vmem>>, vector<1x32xf32>
    %261 = vector.broadcast %260 : vector<1x32xf32> to vector<16x32xf32>
    %262 = arith.addf %259, %261 : vector<16x32xf32>
    %263 = vector.shape_cast %262 : vector<16x32xf32> to vector<2x8x32xf32>
    %c0_89 = arith.constant 0 : index
    %c0_90 = arith.constant 0 : index
    %c0_91 = arith.constant 0 : index
    %264 = vector.load %arg18[%c0_89, %c0_90, %c0_91] : memref<2x8x32xf32, #tpu.memory_space<vmem>>, vector<2x8x32xf32>
    tpu.vector_store %arg18[%c0_89, %c0_90, %c0_91], %263 {strides = array<i32>} : memref<2x8x32xf32, #tpu.memory_space<vmem>>, vector<2x8x32xf32>,
    return
  }
  func.func @transform_0(%arg0: i32) -> (i32, i32, i32) {
    %c0_i32 = arith.constant 0 : i32
    %c0_i32_0 = arith.constant 0 : i32
    %c0_i32_1 = arith.constant 0 : i32
    return %arg0, %c0_i32, %c0_i32_0 : i32, i32, i32
  }
  func.func @transform_1(%arg0: i32) -> (i32, i32) {
    %c0_i32 = arith.constant 0 : i32
    %c0_i32_0 = arith.constant 0 : i32
    %c0_i32_1 = arith.constant 0 : i32
    return %c0_i32, %c0_i32_0 : i32, i32
  }
  func.func @transform_2(%arg0: i32) -> (i32, i32) {
    %c0_i32 = arith.constant 0 : i32
    %c0_i32_0 = arith.constant 0 : i32
    %c0_i32_1 = arith.constant 0 : i32
    return %c0_i32, %c0_i32_0 : i32, i32
  }
  func.func @transform_3(%arg0: i32) -> (i32, i32) {
    %c0_i32 = arith.constant 0 : i32
    %c0_i32_0 = arith.constant 0 : i32
    %c0_i32_1 = arith.constant 0 : i32
    return %c0_i32, %c0_i32_0 : i32, i32
  }
  func.func @transform_4(%arg0: i32) -> (i32, i32) {
    %c0_i32 = arith.constant 0 : i32
    %c0_i32_0 = arith.constant 0 : i32
    %c0_i32_1 = arith.constant 0 : i32
    return %c0_i32, %c0_i32_0 : i32, i32
  }
  func.func @transform_5(%arg0: i32) -> (i32, i32) {
    %c0_i32 = arith.constant 0 : i32
    %c0_i32_0 = arith.constant 0 : i32
    %c0_i32_1 = arith.constant 0 : i32
    return %c0_i32, %c0_i32_0 : i32, i32
  }
  func.func @transform_6(%arg0: i32) -> (i32, i32) {
    %c0_i32 = arith.constant 0 : i32
    %c0_i32_0 = arith.constant 0 : i32
    %c0_i32_1 = arith.constant 0 : i32
    return %c0_i32, %c0_i32_0 : i32, i32
  }
  func.func @transform_7(%arg0: i32) -> (i32, i32) {
    %c0_i32 = arith.constant 0 : i32
    %c0_i32_0 = arith.constant 0 : i32
    %c0_i32_1 = arith.constant 0 : i32
    return %c0_i32, %c0_i32_0 : i32, i32
  }
  func.func @transform_8(%arg0: i32) -> (i32, i32) {
    %c0_i32 = arith.constant 0 : i32
    %c0_i32_0 = arith.constant 0 : i32
    %c0_i32_1 = arith.constant 0 : i32
    return %c0_i32, %c0_i32_0 : i32, i32
  }
  func.func @transform_9(%arg0: i32) -> (i32, i32) {
    %c0_i32 = arith.constant 0 : i32
    %c0_i32_0 = arith.constant 0 : i32
    %c0_i32_1 = arith.constant 0 : i32
    return %c0_i32, %c0_i32_0 : i32, i32
  }
  func.func @transform_10(%arg0: i32) -> (i32, i32) {
    %c0_i32 = arith.constant 0 : i32
    %c0_i32_0 = arith.constant 0 : i32
    %c0_i32_1 = arith.constant 0 : i32
    return %c0_i32, %c0_i32_0 : i32, i32
  }
  func.func @transform_11(%arg0: i32) -> (i32, i32) {
    %c0_i32 = arith.constant 0 : i32
    %c0_i32_0 = arith.constant 0 : i32
    %c0_i32_1 = arith.constant 0 : i32
    return %c0_i32, %c0_i32_0 : i32, i32
  }
  func.func @transform_12(%arg0: i32) -> (i32, i32) {
    %c0_i32 = arith.constant 0 : i32
    %c0_i32_0 = arith.constant 0 : i32
    %c0_i32_1 = arith.constant 0 : i32
    return %c0_i32, %c0_i32_0 : i32, i32
  }
  func.func @transform_13(%arg0: i32) -> (i32, i32) {
    %c0_i32 = arith.constant 0 : i32
    %c0_i32_0 = arith.constant 0 : i32
    %c0_i32_1 = arith.constant 0 : i32
    return %c0_i32, %c0_i32_0 : i32, i32
  }
  func.func @transform_14(%arg0: i32) -> (i32, i32) {
    %c0_i32 = arith.constant 0 : i32
    %c0_i32_0 = arith.constant 0 : i32
    %c0_i32_1 = arith.constant 0 : i32
    return %c0_i32, %c0_i32_0 : i32, i32
  }
  func.func @transform_15(%arg0: i32) -> (i32, i32) {
    %c0_i32 = arith.constant 0 : i32
    %c0_i32_0 = arith.constant 0 : i32
    %c0_i32_1 = arith.constant 0 : i32
    return %c0_i32, %c0_i32_0 : i32, i32
  }
  func.func @transform_16(%arg0: i32) -> (i32, i32) {
    %c0_i32 = arith.constant 0 : i32
    %c0_i32_0 = arith.constant 0 : i32
    %c0_i32_1 = arith.constant 0 : i32
    return %c0_i32, %c0_i32_0 : i32, i32
  }
  func.func @transform_17(%arg0: i32) -> (i32, i32, i32) {
    %c0_i32 = arith.constant 0 : i32
    %c0_i32_0 = arith.constant 0 : i32
    %c0_i32_1 = arith.constant 0 : i32
    return %arg0, %c0_i32, %c0_i32_0 : i32, i32, i32
  }
}

</mosaic_0001>

<bundles_post_ra>
// kernel: tpu_custom_call.1
= control target key start
LH: loop header
LB: loop body
LE: loop exit
PB: predicated region body
PF: predicated region fallthrough
CT: control target
= control target key end

     0   :  { %s3283_s0 = inlined_call_operand.hbm [shape: f32[2,8,16], index: 0, kind: input, shape index: {}]   ;;  %s3284_s1 = inlined_call_operand.hbm [shape: f32[8,8], index: 1, kind: input, shape index: {}]   ;;  %s3285_s2 = inlined_call_operand.hbm [shape: f32[16,32], index: 2, kind: input, shape index: {}]   ;;  %s3286_s3 = inlined_call_operand.vmem [shape: f32[1,32], index: 3, kind: input, shape index: {}]   ;;  %s3287_s4 = inlined_call_operand.hbm [shape: f32[32,32], index: 4, kind: input, shape index: {}]   ;;  %s3288_s5 = inlined_call_operand.vmem [shape: f32[1,32], index: 5, kind: input, shape index: {}]   ;;  %s3289_s6 = inlined_call_operand.hbm [shape: f32[16,32], index: 6, kind: input, shape index: {}]   ;;  %s3290_s7 = inlined_call_operand.vmem [shape: f32[1,32], index: 7, kind: input, shape index: {}]   ;;  %s3291_s8 = inlined_call_operand.hbm [shape: f32[32,32], index: 8, kind: input, shape index: {}]   ;;  %s3292_s9 = inlined_call_operand.vmem [shape: f32[1,32], index: 9, kind: input, shape index: {}]   ;;  %s3293_s10 = inlined_call_operand.vmem [shape: f32[2,32], index: 10, kind: input, shape index: {}]   ;;  %s3294_s11 = inlined_call_operand.vmem [shape: f32[2,32], index: 11, kind: input, shape index: {}]   ;;  %s3295_s12 = inlined_call_operand.vmem [shape: f32[1,2], index: 12, kind: input, shape index: {}]   ;;  %s3296_s13 = inlined_call_operand.hbm [shape: f32[32,96], index: 13, kind: input, shape index: {}]   ;;  %s3297_s14 = inlined_call_operand.vmem [shape: f32[1,96], index: 14, kind: input, shape index: {}]   ;;  %s3298_s15 = inlined_call_operand.hbm [shape: f32[32,32], index: 15, kind: input, shape index: {}]   ;;  %s3299_s16 = inlined_call_operand.vmem [shape: f32[1,32], index: 16, kind: input, shape index: {}]   ;;  %s3300_s17 = inlined_call_operand.hbm [shape: f32[2,8,32], index: 17, kind: output, shape index: {}]  }
   0x1   :  { %3301 = sst [smem:[#allocation23_spill]] %s3283_s0 }
   0x2   :  { %3302 = sst [smem:[#allocation24_spill]] %s3284_s1 }
   0x3   :  { %22 = vsyncpa [#allocation3], 0 }
   0x4   :  { %23 = vsyncpa [#allocation6], 0 }
   0x5   :  { %24 = vsyncpa [#allocation9], 0 }
   0x6   :  { %25 = vsyncpa [#allocation12], 0 }
   0x7   :  { %26 = vsyncpa [#allocation15], 0 }
   0x8   :  { %27 = vsyncpa [#allocation4], 0  ;;  %s2895_s24 = smov [#allocation5]  }
   0x9   :  { %s46_s25 = sshll.u32 %s2895_s24, 4  ;;  %s47_s25 = int_to_ptr.vmem [resolvable:$true] %s46_s25 }
   0xa   :  { %s2711_s26 = scalar_lea.vmem %s47_s25, 128  ;;  %p2716_p1 = scmp.lt.s32.totalorder %s47_s25, %s47_s25 }
   0xb   :  { %p2712_p0 = scmp.ne.s32.totalorder %s47_s25, %s2711_s26  ;;  %p2717_p2 = scmp.lt.s32.totalorder %s2711_s26, %s2711_s26 }
   0xd   :  { %p2718_p3 = por %p2717_p2, %p2716_p1 }
   0xf   :  { %p2719_p4 = pnand %p2718_p3, %p2712_p0 }
  0x11   :  { %2722 = shalt.err (!%p2719_p4)
}
  0x12   :  { %s3303_s29 = sld [smem:[#allocation24_spill]]  ;;  %s2896_s0 = smov [#allocation8]  }
  0x13   :  { %s69_s30 = sshll.u32 %s2896_s0, 4  ;;  %s2897_s18 = smov [#allocation11]   ;;  %s70_s30 = int_to_ptr.vmem [resolvable:$true] %s69_s30 }
  0x14   :  { %s97_s19 = sshll.u32 %s2897_s18, 4  ;;  %s2731_s1 = scalar_lea.vmem %s70_s30, 512  ;;  %s98_s19 = int_to_ptr.vmem [resolvable:$true] %s97_s19 }
  0x15   :  { %p2732_p5 = scmp.ne.s32.totalorder %s70_s30, %s2731_s1  ;;  %p2736_p6 = scmp.lt.s32.totalorder %s70_s30, %s70_s30 }
  0x16   :  { %p2737_p7 = scmp.lt.s32.totalorder %s2731_s1, %s2731_s1 }
  0x18   :  { %49 = dma.hbm_to_vmem [thread:$0]  %s3303_s29, 128, %s47_s25, [#allocation6]  }
  0x19   :  { %p2738_p8 = por %p2737_p7, %p2736_p6 }
  0x1b   :  { %p2739_p9 = pnand %p2738_p8, %p2732_p5 }
  0x1d   :  { %2742 = shalt.err (!%p2739_p9)
}
  0x1e   :  { %s2898_s20 = smov 128   ;;  %s2899_s21 = smov 8  }
  0x1f   :  { %75 = dma.hbm_to_vmem [thread:$0]  %s3287_s4, 512, %s70_s30, [#allocation9], %s2898_s20, %s2898_s20, %s2899_s21  }
  0x20   :  { %s2751_s24 = scalar_lea.vmem %s98_s19, 512  ;;  %p2756_p11 = scmp.lt.s32.totalorder %s98_s19, %s98_s19 }
  0x21   :  { %p2752_p10 = scmp.ne.s32.totalorder %s98_s19, %s2751_s24  ;;  %p2757_p12 = scmp.lt.s32.totalorder %s2751_s24, %s2751_s24 }
  0x23   :  { %p2758_p13 = por %p2757_p12, %p2756_p11 }
  0x25   :  { %p2759_p0 = pnand %p2758_p13, %p2752_p10 }
  0x27   :  { %2762 = shalt.err (!%p2759_p0)
}
  0x28   :  { %103 = dma.hbm_to_vmem [thread:$0]  %s3291_s8, 512, %s98_s19, [#allocation12], %s2898_s20, %s2898_s20, %s2899_s21  }
  0x29   :  { %s2900_s27 = smov [#allocation2]   ;;  %s2901_s29 = smov [#allocation7]  }
  0x2a   :  { %s33_s28 = sshll.u32 %s2900_s27, 4  ;;  %s55_s4 = sshll.u32 %s2901_s29, 4  ;;  %s34_s28 = int_to_ptr.vmem [resolvable:$true] %s33_s28  ;;  %s56_s4 = int_to_ptr.vmem [resolvable:$true] %s55_s4 }
  0x2b   :  { %s2771_s0 = scalar_lea.vmem %s34_s28, 256  ;;  %p2776_p2 = scmp.lt.s32.totalorder %s34_s28, %s34_s28 }
  0x2c   :  { %p2772_p1 = scmp.ne.s32.totalorder %s34_s28, %s2771_s0  ;;  %p2777_p3 = scmp.lt.s32.totalorder %s2771_s0, %s2771_s0 }
  0x2e   :  { %p2778_p4 = por %p2777_p3, %p2776_p2 }
  0x30   :  { %p2779_p5 = pnand %p2778_p4, %p2772_p1 }
  0x32   :  { %2782 = shalt.err (!%p2779_p5)
}
  0x33   :  { %s3304_s1 = sld [smem:[#allocation23_spill]]  ;;  %s2791_s8 = scalar_lea.vmem %s56_s4, 256 }
  0x34   :  { %p2792_p6 = scmp.ne.s32.totalorder %s56_s4, %s2791_s8  ;;  %p2796_p7 = scmp.lt.s32.totalorder %s56_s4, %s56_s4 }
  0x35   :  { %p2797_p8 = scmp.lt.s32.totalorder %s2791_s8, %s2791_s8 }
  0x37   :  { %p2798_p9 = por %p2797_p8, %p2796_p7 }
  0x39   :  { %39 = dma.hbm_to_vmem [thread:$0]  %s3304_s1, 256, %s34_s28, [#allocation3], %s2898_s20, %s2898_s20, %s2899_s21  }
  0x3a   :  { %p2799_p10 = pnand %p2798_p9, %p2792_p6 }
  0x3c   :  { %2802 = shalt.err (!%p2799_p10)
}
  0x3d   :  { %61 = dma.hbm_to_vmem [thread:$0]  %s3285_s2, 256, %s56_s4, [#allocation6], %s2898_s20, %s2898_s20, %s2899_s21  }
  0x3e   :  { %s2902_s23 = smov [#allocation10]   ;;  %s2903_s25 = smov [#allocation13]  }
  0x3f   :  { %s83_s24 = sshll.u32 %s2902_s23, 4  ;;  %s117_s26 = sshll.u32 %s2903_s25, 4  ;;  %s84_s24 = int_to_ptr.vmem [resolvable:$true] %s83_s24  ;;  %s118_s26 = int_to_ptr.vmem [resolvable:$true] %s117_s26 }
  0x40   :  { %s2811_s27 = scalar_lea.vmem %s84_s24, 256  ;;  %p2816_p12 = scmp.lt.s32.totalorder %s84_s24, %s84_s24 }
  0x41   :  { %p2812_p11 = scmp.ne.s32.totalorder %s84_s24, %s2811_s27  ;;  %p2817_p13 = scmp.lt.s32.totalorder %s2811_s27, %s2811_s27 }
  0x43   :  { %p2818_p0 = por %p2817_p13, %p2816_p12 }
  0x45   :  { %p2819_p1 = pnand %p2818_p0, %p2812_p11 }
  0x47   :  { %2822 = shalt.err (!%p2819_p1)
}
  0x48   :  { %89 = dma.hbm_to_vmem [thread:$0]  %s3289_s6, 256, %s84_s24, [#allocation9], %s2898_s20, %s2898_s20, %s2899_s21  }
  0x49   :  { %s2831_s2 = scalar_lea.vmem %s118_s26, 512  ;;  %p2836_p3 = scmp.lt.s32.totalorder %s118_s26, %s118_s26 }
  0x4a   :  { %p2832_p2 = scmp.ne.s32.totalorder %s118_s26, %s2831_s2  ;;  %p2837_p4 = scmp.lt.s32.totalorder %s2831_s2, %s2831_s2 }
  0x4c   :  { %p2838_p5 = por %p2837_p4, %p2836_p3 }
  0x4e   :  { %p2839_p6 = pnand %p2838_p5, %p2832_p2 }
  0x50   :  { %2842 = shalt.err (!%p2839_p6)
}
  0x51   :  { %123 = dma.hbm_to_vmem [thread:$0]  %s3296_s13, 512, %s118_s26, [#allocation12], %s2898_s20, %s2898_s20, %s2899_s21  }
  0x52   :  { %s2904_s30 = smov [#allocation14]  }
  0x53   :  { %s131_s18 = sshll.u32 %s2904_s30, 4  ;;  %s132_s18 = int_to_ptr.vmem [resolvable:$true] %s131_s18 }
  0x54   :  { %s2851_s1 = scalar_lea.vmem %s132_s18, 512  ;;  %p2856_p8 = scmp.lt.s32.totalorder %s132_s18, %s132_s18 }
  0x55   :  { %p2852_p7 = scmp.ne.s32.totalorder %s132_s18, %s2851_s1  ;;  %p2857_p9 = scmp.lt.s32.totalorder %s2851_s1, %s2851_s1 }
  0x57   :  { %p2858_p10 = por %p2857_p9, %p2856_p8 }
  0x59   :  { %p2859_p11 = pnand %p2858_p10, %p2852_p7 }
  0x5b   :  { %2862 = shalt.err (!%p2859_p11)
}
  0x5c   :  { %137 = dma.hbm_to_vmem [thread:$0]  %s3298_s15, 512, %s132_s18, [#allocation15], %s2898_s20, %s2898_s20, %s2899_s21  }
  0x5d   :  { %2883 = dma.done.wait [#allocation3], 256  }
  0x5e   :  { %2884 = vsyncadd [#allocation3], 4294967040 }
  0x5f   :  { %2885 = dma.done.wait [#allocation6], 384  }
  0x60   :  { %2886 = vsyncadd [#allocation6], 4294966912 }
  0x61   :  { %2887 = dma.done.wait [#allocation9], 768  }
  0x62   :  { %2888 = vsyncadd [#allocation9], 4294966528 }
  0x63   :  { %2889 = dma.done.wait [#allocation12], 1024  }
  0x64   :  { %2890 = vsyncadd [#allocation12], 4294966272 }
  0x65   :  { %2891 = dma.done.wait [#allocation15], 512  }
  0x66   :  { %2892 = vsyncadd [#allocation15], 4294966784  ;;  %v2905_v0 = vmov 0.0   ;;  %vm2906_vm0 = vmmov 0   ;;  %vm167_vm1 = vcmask 64512   ;;  %v164_v1 = vld [vmem:[#allocation2] sm:$0xff]  ;;  %v686_v36 = vlaneseq }
  0x67   :  { %2475 = vmatprep.subr.mxu0 %v2905_v0  ;;  %2480 = vmatprep.subr.mxu1 %v2905_v0  ;;  %v165_v2 = vld [vmem:[#allocation2 + $0x8] sm:$0xff]  ;;  %v166_v3 = vld [vmem:[#allocation5] sm:$0xff]  ;;  %v314_v6 = vld [vmem:[#allocation7 + $0x8] sm:$0xff]  ;;  %vm327_vm2 = vcmask 130048   ;;  %vm417_vm3 = vcmask 261120   ;;  %s2910_s29 = smov 96  }
  0x68   :  { %2477 = vmatprep.mubr.msk.f32.mxu0 %vm2906_vm0, %v2905_v0  ;;  %2482 = vmatprep.mubr.msk.f32.mxu1 %vm2906_vm0, %v2905_v0  ;;  %v500_v4 = vld [vmem:[#allocation10 + $0x8] sm:$0xff]  ;;  %v499_v5 = vld [vmem:[#allocation10] sm:$0xff]  ;;  %v313_v7 = vld [vmem:[#allocation7] sm:$0xff]  ;;  %v687_v37 = vshrl.u32 %v686_v36, 7  ;;  %s2911_s2 = smov 88   ;;  %s2912_s4 = smov 120  }
  0x69   :  { %2476 = vmatpush3.msra.mxu0 %v164_v1  ;;  %2481 = vmatpush3.msra.mxu1 %v165_v2  ;;  %v505_v14 = vld [vmem:[#allocation11 + $0x18] sm:$0xff]  ;;  %v319_v15 = vld [vmem:[#allocation8 + $0x18] sm:$0xff]  ;;  %v504_v16 = vld [vmem:[#allocation11 + $0x10] sm:$0xff]  ;;  %s2914_s0 = smov 112   ;;  %s2915_s30 = smov 104   ;;  %vm1565_vm4 = vcmask 195584  }
  0x6a   :  { %2478 = vmatmul.mubr.msk.f32.vlgmr.msra.gmra.mxu0 %vm167_vm1, %v166_v3  ;;  %2483 = vmatmul.mubr.msk.f32.vlgmr.msra.gmra.mxu1 %vm167_vm1, %v166_v3  ;;  %v318_v17 = vld [vmem:[#allocation8 + $0x10] sm:$0xff]  ;;  %v503_v18 = vld [vmem:[#allocation11 + $0x8] sm:$0xff]  ;;  %v317_v19 = vld [vmem:[#allocation8 + $0x8] sm:$0xff]  ;;  %v688_v38 = vsub.s32 0, %v687_v37  ;;  %v722_v41 = vsub.s32 1, %v687_v37  ;;  %s2916_s18 = smov 64  }
  0x6b   :  { %2503 = vmatprep.subr.mxu0 %v500_v4  ;;  %2485 = vmatprep.subr.mxu1 %v314_v6  ;;  %v502_v20 = vld [vmem:[#allocation11] sm:$0xff]  ;;  %v316_v21 = vld [vmem:[#allocation8] sm:$0xff]  ;;  %v2366_v22 = vld [vmem:[%s3290_s7] ss:$0 sm:$0xff]  ;;  %s2917_s1 = smov 48   ;;  %s2918_s6 = smov 56  }
  0x6c   :  { %2504 = vmatpush3.msra.mxu0 %v500_v4  ;;  %2486 = vmatpush3.msra.mxu1 %v314_v6  ;;  %v2360_v24 = vld [vmem:[%s3286_s3] ss:$0 sm:$0xff]  ;;  %s2919_s8 = smov 40   ;;  %s2920_s13 = smov 16  }
  0x6d   :  { %2505 = vmatprep.subr.mxu0 %v499_v5  ;;  %2487 = vmatprep.subr.mxu1 %v313_v7  ;;  %v684_v39 = vld [vmem:[%s3294_s11] sm:$0x3]  ;;  %s2921_s15 = smov 24   ;;  %s2922_s3 = smov [#allocation16]  }
  0x6e   :  { %2506 = vmatpush3.msra.mxu0 %v499_v5  ;;  %2488 = vmatpush3.msra.mxu1 %v313_v7  ;;  %v2369_v40 = vld [vmem:[%s3292_s9] ss:$0 sm:$0xff]  ;;  %v701_v42 = vrot.slane %v684_v39, %v688_v38  ;;  %v735_v49 = vrot.slane %v684_v39, %v722_v41  ;;  %s2342_s7 = sshll.u32 %s2922_s3, 4  ;;  %s2343_s7 = int_to_ptr.vmem [resolvable:$true] %s2342_s7 }
  0x6f   :  { %2510 = vmatprep.subr.mxu0 %v505_v14  ;;  %2492 = vmatprep.subr.mxu1 %v319_v15  ;;  %v2363_v44 = vld [vmem:[%s3288_s5] ss:$0 sm:$0xff]  ;;  %s2863_s23 = scalar_lea.vmem %s2343_s7, 256  ;;  %p2868_p13 = scmp.lt.s32.totalorder %s2343_s7, %s2343_s7 }
  0x70   :  { %v683_v45 = vld [vmem:[%s3293_s10] sm:$0x3]  ;;  %p2864_p12 = scmp.ne.s32.totalorder %s2343_s7, %s2863_s23  ;;  %p2869_p0 = scmp.lt.s32.totalorder %s2863_s23, %s2863_s23 }
  0x71   :  { %v689_v53 = vrot.slane %v683_v45, %v688_v38  ;;  %v723_v61 = vrot.slane %v683_v45, %v722_v41  ;;  %v799_v45 = vld [vmem:[#allocation13 + $0x8] sm:$0xff] }
  0x72   :  { %p2870_p1 = por %p2869_p0, %p2868_p13 }
  0x74   :  { %p2871_p2 = pnand %p2870_p1, %p2864_p12 }
 0x12a   :  { %v237_v8 = vpop.f32.mrf.mxu0  ;;  %v307_v9 = vpop.f32.mrf.mxu1 }
 0x12b   :  { %v311_v10 = vsub.f32 %v164_v1, %v237_v8  ;;  %v312_v11 = vsub.f32 %v165_v2, %v307_v9  ;;  %2507 = vmatprep.mubr.msk.f32.mxu0 %vm327_vm2, %v237_v8 }
 0x12c   :  { %v2479_v12 = vpop.f32.mrf.mxu0  ;;  %v2484_v13 = vpop.f32.mrf.mxu1  ;;  %2508 = vmatmul.mubr.msk.f32.vlgmr.msra.gmra.mxu0 %vm327_vm2, %v307_v9  ;;  %v2907_v9 = vmov 0  }
 0x12d   :  { %2489 = vmatprep.mubr.msk.f32.mxu1 %vm327_vm2, %v311_v10  ;;  %2511 = vmatpush3.msra.mxu0 %v505_v14  ;;  %v2372_v13 = vld [vmem:[%s3295_s12] ss:$0 sm:$0xff]  ;;  %s2909_s12 = smov 72  }
 0x12e   :  { %2490 = vmatmul.mubr.msk.f32.vlgmr.msra.gmra.mxu1 %vm327_vm2, %v312_v11  ;;  %2512 = vmatprep.subr.mxu0 %v504_v16 }
 0x12f   :  { %2493 = vmatpush3.msra.mxu1 %v319_v15  ;;  %2513 = vmatpush3.msra.mxu0 %v504_v16 }
 0x130   :  { %2494 = vmatprep.subr.mxu1 %v318_v17  ;;  %2514 = vmatprep.subr.mxu0 %v503_v18 }
 0x131   :  { %2495 = vmatpush3.msra.mxu1 %v318_v17  ;;  %2515 = vmatpush3.msra.mxu0 %v503_v18 }
 0x132   :  { %2496 = vmatprep.subr.mxu1 %v317_v19  ;;  %2516 = vmatprep.subr.mxu0 %v502_v20 }
 0x133   :  { %2497 = vmatpush3.msra.mxu1 %v317_v19  ;;  %2517 = vmatpush3.msra.mxu0 %v502_v20 }
 0x134   :  { %2498 = vmatprep.subr.mxu1 %v316_v21  ;;  %2532 = vmatprep.subr.mxu0 %v2905_v0 }
 0x135   :  { %2499 = vmatpush3.msra.mxu1 %v316_v21  ;;  %2652 = vset.pattern.permute.xlu1 %v2907_v9 }
 0x136   :  { %2651 = vset.pattern.permute.xlu0 %v2907_v9 }
 0x1ec   :  { %v2509_v23 = vpop.f32.mrf.mxu0 }
 0x1ed   :  { %v591_v25 = vadd.f32 %v2509_v23, %v2366_v22 }
 0x1ee   :  { %v2491_v26 = vpop.f32.mrf.mxu1  ;;  %v585_v27 = vpop.f32.mrf.mxu0 }
 0x1ef   :  { %v586_v28 = vadd.f32 %v2366_v22, %v585_v27  ;;  %v406_v29 = vadd.f32 %v2491_v26, %v2360_v24  ;;  %v595_v33 = vmax.f32 %v591_v25, 0.0 }
 0x1f0   :  { %v400_v30 = vpop.f32.mrf.mxu1 }
 0x1f1   :  { %v594_v31 = vmax.f32 %v586_v28, 0.0  ;;  %v401_v32 = vadd.f32 %v2360_v24, %v400_v30  ;;  %v410_v35 = vmax.f32 %v406_v29, 0.0 }
 0x1f3   :  { %v409_v34 = vmax.f32 %v401_v32, 0.0  ;;  %2518 = vmatprep.mubr.msk.f32.mxu0 %vm417_vm3, %v594_v31 }
 0x1f4   :  { %2519 = vmatmul.mubr.msk.f32.vlgmr.msra.gmra.mxu0 %vm417_vm3, %v595_v33 }
 0x1f5   :  { %2500 = vmatprep.mubr.msk.f32.mxu1 %vm417_vm3, %v409_v34  ;;  %2534 = vmatprep.mubr.msk.f32.mxu0 %vm2906_vm0, %v2905_v0 }
 0x1f6   :  { %2501 = vmatmul.mubr.msk.f32.vlgmr.msra.gmra.mxu1 %vm417_vm3, %v410_v35 }
 0x2b4   :  { %v2520_v43 = vpop.f32.mrf.mxu0 }
 0x2b5   :  { %v3095_v46 = vadd.f32 %v2520_v43, %v2369_v40 }
 0x2b6   :  { %v2502_v47 = vpop.f32.mrf.mxu1  ;;  %v674_v48 = vpop.f32.mrf.mxu0 }
 0x2b7   :  { %v3097_v50 = vadd.f32 %v2502_v47, %v2363_v44  ;;  %v3099_v51 = vadd.f32 %v2369_v40, %v674_v48  ;;  %v703_v52 = vmul.f32 %v701_v42, %v3095_v46  ;;  %v737_v4 = vmul.f32 %v735_v49, %v3095_v46  ;;  %v801_v40 = vld [vmem:[#allocation13 + $0x18] sm:$0xff]  ;;  %v798_v48 = vld [vmem:[#allocation13] sm:$0xff] }
 0x2b8   :  { %v490_v54 = vpop.f32.mrf.mxu1  ;;  %2521 = vmatprep.subr.mxu1 %v801_v40 }
 0x2b9   :  { %v3102_v55 = vadd.f32 %v2363_v44, %v490_v54  ;;  %v707_v56 = vsel %vm417_vm3, %v703_v52, 0.0  ;;  %v702_v57 = vmul.f32 %v701_v42, %v3099_v51  ;;  %v736_v58 = vmul.f32 %v735_v49, %v3099_v51  ;;  %2522 = vmatpush3.msra.mxu1 %v801_v40  ;;  %v800_v42 = vld [vmem:[#allocation13 + $0x10] sm:$0xff] }
 0x2ba   :  { %708 = vadd.xlane.f32.xlu1 %v707_v56  ;;  %v691_v60 = vmul.f32 %v689_v53, %v3097_v50  ;;  %v725_v6 = vmul.f32 %v723_v61, %v3097_v50  ;;  %v741_v7 = vsel %vm417_vm3, %v737_v4, 0.0  ;;  %v2908_v44 = vmov 1   ;;  %2523 = vmatprep.subr.mxu1 %v800_v42 }
 0x2bb   :  { %v704_v59 = vsel %vm417_vm3, %v702_v57, 0.0  ;;  %v738_v62 = vsel %vm417_vm3, %v736_v58, 0.0  ;;  %v724_v63 = vmul.f32 %v723_v61, %v3102_v55  ;;  %v690_v2 = vmul.f32 %v689_v53, %v3102_v55  ;;  %2524 = vmatpush3.msra.mxu1 %v800_v42 }
 0x2bc   :  { %705 = vadd.xlane.f32.xlu0 %v704_v59  ;;  %v695_v1 = vsel %vm417_vm3, %v691_v60, 0.0  ;;  %v729_v8 = vsel %vm417_vm3, %v725_v6, 0.0  ;;  %2525 = vmatprep.subr.mxu1 %v799_v45 }
 0x2bd   :  { %v726_v3 = vsel %vm417_vm3, %v724_v63, 0.0  ;;  %v692_v5 = vsel %vm417_vm3, %v690_v2, 0.0  ;;  %2526 = vmatpush3.msra.mxu1 %v799_v45 }
 0x2be   :  { %739 = vadd.xlane.f32.xlu1 %v738_v62  ;;  %2527 = vmatprep.subr.mxu1 %v798_v48 }
 0x2bf   :  { %2528 = vmatpush3.msra.mxu1 %v798_v48 }
 0x2c0   :  { %696 = vadd.xlane.f32.xlu0 %v695_v1  ;;  %2537 = vmatprep.subr.mxu1 %v2905_v0 }
 0x2c2   :  { %727 = vadd.xlane.f32.xlu1 %v726_v3 }
 0x2c4   :  { %693 = vadd.xlane.f32.xlu0 %v692_v5 }
 0x2c6   :  { %742 = vadd.xlane.f32.xlu1 %v741_v7 }
 0x2c8   :  { %730 = vadd.xlane.f32.xlu0 %v729_v8 }
 0x343   :  { %v709_v10 = vpop.xlane.xlu1 %708 }
 0x345   :  { %v706_v11 = vpop.xlane.xlu0 %705 }
 0x347   :  { %v740_v12 = vpop.xlane.xlu1 %739 }
 0x349   :  { %v697_v14 = vpop.xlane.xlu0 %696 }
 0x34a   :  { %v711_v15 = vadd.f32 %v709_v10, %v697_v14 }
 0x34b   :  { %v728_v16 = vpop.xlane.xlu1 %727 }
 0x34c   :  { %v719_v17 = vadd.f32 %v2372_v13, %v711_v15  ;;  %v744_v18 = vadd.f32 %v740_v12, %v728_v16 }
 0x34d   :  { %v694_v19 = vpop.xlane.xlu0 %693 }
 0x34e   :  { %v2374_v20 = vmul.f32 -1.442695, %v719_v17  ;;  %v746_v21 = vadd.f32 %v2372_v13, %v744_v18  ;;  %v710_v22 = vadd.f32 %v706_v11, %v694_v19 }
 0x34f   :  { %v743_v25 = vpop.xlane.xlu1 %742 }
 0x350   :  { %2655 = vpow2.f32 %v2374_v20  ;;  %v2375_v23 = vmul.f32 -1.442695, %v746_v21  ;;  %v718_v24 = vadd.f32 %v2372_v13, %v710_v22 }
 0x351   :  { %v731_v26 = vpop.xlane.xlu0 %730 }
 0x352   :  { %2657 = vpow2.f32 %v2375_v23  ;;  %v2373_v27 = vmul.f32 -1.442695, %v718_v24  ;;  %v745_v28 = vadd.f32 %v743_v25, %v731_v26 }
 0x354   :  { %2659 = vpow2.f32 %v2373_v27  ;;  %v747_v29 = vadd.f32 %v2372_v13, %v745_v28 }
 0x356   :  { %v2376_v30 = vmul.f32 -1.442695, %v747_v29 }
 0x358   :  { %2661 = vpow2.f32 %v2376_v30 }
 0x35d   :  { %v2656_v31 = vpop.eup %2655 }
 0x35e   :  { %v755_v32 = vadd.f32 1.0, %v2656_v31 }
 0x35f   :  { %v2658_v33 = vpop.eup %2657 }
 0x360   :  { %2663 = vrcp.f32 %v755_v32  ;;  %v766_v35 = vadd.f32 1.0, %v2658_v33 }
 0x361   :  { %v2660_v34 = vpop.eup %2659 }
 0x362   :  { %v754_v36 = vadd.f32 1.0, %v2660_v34 }
 0x364   :  { %2665 = vrcp.f32 %v754_v36 }
 0x365   :  { %v2662_v37 = vpop.eup %2661  ;;  %2667 = vrcp.f32 %v766_v35 }
 0x366   :  { %v767_v38 = vadd.f32 1.0, %v2662_v37 }
 0x368   :  { %2669 = vrcp.f32 %v767_v38 }
 0x36d   :  { %v2664_v39 = vpop.eup %2663 }
 0x36e   :  { %779 = vperm.xlu1 %2652, %v2664_v39  }
 0x371   :  { %v2666_v41 = vpop.eup %2665 }
 0x372   :  { %v2668_v43 = vpop.eup %2667  ;;  %2653 = vset.pattern.permute.xlu1 %v2908_v44  ;;  %774 = vperm.xlu0 %2651, %v2666_v41  }
 0x373   :  { %786 = vperm.xlu1 %2653, %v2668_v43  }
 0x375   :  { %v2670_v47 = vpop.eup %2669 }
 0x376   :  { %2654 = vset.pattern.permute.xlu0 %v2908_v44 }
 0x377   :  { %791 = vperm.xlu1 %2653, %v2670_v47  }
 0x3e9   :  { %v780_v49 = vpop.permute.xlu1 %779 }
 0x3ea   :  { %v783_v59 = vmul.f32 %v780_v49, %v3095_v46 }
 0x3ed   :  { %v775_v52 = vpop.permute.xlu0 %774 }
 0x3ee   :  { %v782_v53 = vmul.f32 %v775_v52, %v3099_v51  ;;  %v787_v54 = vpop.permute.xlu1 %786  ;;  %v2377_v51 = vld [vmem:[%s3297_s14] ss:$0 sm:$0xff]  ;;  %s2913_s14 = smov 80  }
 0x3ef   :  { %v794_v56 = vmul.f32 %v787_v54, %v3102_v55 }
 0x3f1   :  { %v796_v57 = vadd.f32 %v794_v56, %v782_v53 }
 0x3f2   :  { %v792_v58 = vpop.permute.xlu1 %791 }
 0x3f3   :  { %v795_v60 = vmul.f32 %v792_v58, %v3097_v50  ;;  %2529 = vmatprep.mubr.msk.f32.mxu1 %vm417_vm3, %v796_v57 }
 0x3f5   :  { %v797_v61 = vadd.f32 %v795_v60, %v783_v59 }
 0x3f7   :  { %2530 = vmatmul.mubr.msk.f32.vlgmr.msra.gmra.mxu1 %vm417_vm3, %v797_v61 }
 0x3f8   :  { %2539 = vmatprep.mubr.msk.f32.mxu1 %vm2906_vm0, %v2905_v0 }
 0x4b7   :  { %v2531_v62 = vpop.f32.mrf.mxu1 }
 0x4b8   :  { %v3138_v46 = vadd.f32 %v2531_v62, %v2377_v51 }
 0x4b9   :  { %v881_v55 = vpop.f32.mrf.mxu1 }
 0x4ba   :  { %v3134_v63 = vadd.f32 %v2377_v51, %v881_v55  ;;  %v1567_v50 = vmul.f32 0.35355338, %v3138_v46 }
 0x4bc   :  { %1388 = vrot.lane.b32.xlu0 %v3134_v63, %s2909_s12  ;;  %892 = vrot.lane.b32.xlu1 %v3134_v63, %s2910_s29  ;;  %v890_v1 = vmul.f32 0.35355338, %v3134_v63 }
 0x4c0   :  { %1569 = vrot.lane.b32.xlu0 %v3138_v46, %s2910_s29  ;;  %1058 = vrot.lane.b32.xlu1 %v3134_v63, %s2911_s2 }
 0x4c4   :  { %1733 = vrot.lane.b32.xlu0 %v1567_v50, %s2912_s4  ;;  %1223 = vrot.lane.b32.xlu1 %v3134_v63, %s2913_s14 }
 0x4c8   :  { %1898 = vrot.lane.b32.xlu0 %v1567_v50, %s2914_s0  ;;  %1056 = vrot.lane.b32.xlu1 %v890_v1, %s2912_s4 }
 0x4cc   :  { %2063 = vrot.lane.b32.xlu0 %v1567_v50, %s2915_s30  ;;  %1221 = vrot.lane.b32.xlu1 %v890_v1, %s2914_s0 }
 0x4d0   :  { %1386 = vrot.lane.b32.xlu1 %v890_v1, %s2915_s30 }
 0x4d4   :  { %1735 = vrot.lane.b32.xlu1 %v3138_v46, %s2911_s2 }
 0x4d8   :  { %1900 = vrot.lane.b32.xlu1 %v3138_v46, %s2913_s14 }
 0x4dc   :  { %2065 = vrot.lane.b32.xlu1 %v3138_v46, %s2909_s12 }
 0x4e0   :  { %980 = vrot.lane.b32.xlu1 %v3134_v63, %s2916_s18 }
 0x52e   :  { %v893_v2 = vpop.permute.xlu1 %892  ;;  %v1389_v5 = vpop.permute.xlu0 %1388 }
 0x52f   :  { %2533 = vmatpush3.xpose.msk.msra.mxu0 %vm167_vm1, %v893_v2 }
 0x530   :  { %2542 = vmatprep.subr.mxu0 %v2905_v0 }
 0x532   :  { %v1059_v3 = vpop.permute.xlu1 %1058  ;;  %2535 = vmatmul.mubr.msk.f32.vlgmr.msra.gmra.mxu0 %vm167_vm1, %v890_v1  ;;  %v1570_v8 = vpop.permute.xlu0 %1569 }
 0x533   :  { %2543 = vmatpush3.xpose.msk.msra.mxu0 %vm167_vm1, %v1059_v3  ;;  %2544 = vmatprep.mubr.msk.f32.mxu0 %vm2906_vm0, %v2905_v0 }
 0x534   :  { %2552 = vmatprep.subr.mxu0 %v2905_v0 }
 0x536   :  { %v1224_v4 = vpop.permute.xlu1 %1223  ;;  %v1734_v10 = vpop.permute.xlu0 %1733 }
 0x53a   :  { %v1057_v6 = vpop.permute.xlu1 %1056  ;;  %v1899_v13 = vpop.permute.xlu0 %1898 }
 0x53b   :  { %2545 = vmatmul.mubr.msk.f32.vlgmr.msra.gmra.mxu0 %vm167_vm1, %v1057_v6 }
 0x53c   :  { %2553 = vmatpush3.xpose.msk.msra.mxu0 %vm167_vm1, %v1224_v4  ;;  %2554 = vmatprep.mubr.msk.f32.mxu0 %vm2906_vm0, %v2905_v0 }
 0x53d   :  { %2562 = vmatprep.subr.mxu0 %v2905_v0 }
 0x53e   :  { %v1222_v7 = vpop.permute.xlu1 %1221  ;;  %v2064_v15 = vpop.permute.xlu0 %2063 }
 0x53f   :  { %2555 = vmatmul.mubr.msk.f32.vlgmr.msra.gmra.mxu0 %vm167_vm1, %v1222_v7 }
 0x540   :  { %2563 = vmatpush3.xpose.msk.msra.mxu0 %vm167_vm1, %v1389_v5  ;;  %2564 = vmatprep.mubr.msk.f32.mxu0 %vm2906_vm0, %v2905_v0 }
 0x541   :  { %2572 = vmatprep.subr.mxu0 %v2905_v0 }
 0x542   :  { %v1387_v9 = vpop.permute.xlu1 %1386 }
 0x543   :  { %2565 = vmatmul.mubr.msk.f32.vlgmr.msra.gmra.mxu0 %vm167_vm1, %v1387_v9 }
 0x544   :  { %2573 = vmatpush3.xpose.msk.msra.mxu0 %vm167_vm1, %v1570_v8  ;;  %2574 = vmatprep.mubr.msk.f32.mxu0 %vm2906_vm0, %v2905_v0 }
 0x545   :  { %2582 = vmatprep.subr.mxu0 %v2905_v0 }
 0x546   :  { %v1736_v11 = vpop.permute.xlu1 %1735 }
 0x547   :  { %2575 = vmatmul.mubr.msk.f32.vlgmr.msra.gmra.mxu0 %vm167_vm1, %v1567_v50 }
 0x548   :  { %2583 = vmatpush3.xpose.msk.msra.mxu0 %vm167_vm1, %v1736_v11  ;;  %2584 = vmatprep.mubr.msk.f32.mxu0 %vm2906_vm0, %v2905_v0 }
 0x549   :  { %2592 = vmatprep.subr.mxu0 %v2905_v0 }
 0x54a   :  { %v1901_v12 = vpop.permute.xlu1 %1900 }
 0x54b   :  { %2585 = vmatmul.mubr.msk.f32.vlgmr.msra.gmra.mxu0 %vm167_vm1, %v1734_v10 }
 0x54c   :  { %2593 = vmatpush3.xpose.msk.msra.mxu0 %vm167_vm1, %v1901_v12  ;;  %2594 = vmatprep.mubr.msk.f32.mxu0 %vm2906_vm0, %v2905_v0 }
 0x54d   :  { %2602 = vmatprep.subr.mxu0 %v2905_v0 }
 0x54e   :  { %v2066_v14 = vpop.permute.xlu1 %2065 }
 0x54f   :  { %2595 = vmatmul.mubr.msk.f32.vlgmr.msra.gmra.mxu0 %vm167_vm1, %v1899_v13 }
 0x550   :  { %2603 = vmatpush3.xpose.msk.msra.mxu0 %vm167_vm1, %v2066_v14  ;;  %2604 = vmatprep.mubr.msk.f32.mxu0 %vm2906_vm0, %v2905_v0 }
 0x552   :  { %v981_v16 = vpop.permute.xlu1 %980 }
 0x553   :  { %2538 = vmatpush3.msra.mxu1 %v981_v16  ;;  %2605 = vmatmul.mubr.msk.f32.vlgmr.msra.gmra.mxu0 %vm167_vm1, %v2064_v15 }
 0x554   :  { %2547 = vmatprep.subr.mxu1 %v2905_v0 }
 0x5f2   :  { %v965_v17 = vpop.f32.mrf.mxu0 }
 0x5f3   :  { %v969_v18 = vsel %vm167_vm1, %v965_v17, -inf }
 0x5f4   :  { %970 = vmax.xlane.f32.xlu1 %v969_v18  ;;  %v2536_v19 = vpop.f32.mrf.mxu0 }
 0x5fb   :  { %v1130_v20 = vpop.f32.mrf.mxu0 }
 0x5fc   :  { %v1134_v21 = vsel %vm167_vm1, %v1130_v20, -inf }
 0x5fd   :  { %1135 = vmax.xlane.f32.xlu0 %v1134_v21  ;;  %v2546_v22 = vpop.f32.mrf.mxu0 }
 0x5ff   :  { %v1295_v23 = vpop.f32.mrf.mxu0 }
 0x600   :  { %v1299_v24 = vsel %vm167_vm1, %v1295_v23, -inf }
 0x601   :  { %1300 = vmax.xlane.f32.xlu0 %v1299_v24  ;;  %v2556_v25 = vpop.f32.mrf.mxu0 }
 0x603   :  { %v1460_v26 = vpop.f32.mrf.mxu0 }
 0x604   :  { %v1464_v27 = vsel %vm167_vm1, %v1460_v26, -inf }
 0x605   :  { %1465 = vmax.xlane.f32.xlu1 %v1464_v27  ;;  %v2566_v28 = vpop.f32.mrf.mxu0 }
 0x607   :  { %v1642_v29 = vpop.f32.mrf.mxu0 }
 0x608   :  { %v1646_v30 = vsel %vm167_vm1, %v1642_v29, -inf }
 0x609   :  { %1647 = vmax.xlane.f32.xlu0 %v1646_v30  ;;  %v2576_v31 = vpop.f32.mrf.mxu0 }
 0x60b   :  { %v1807_v32 = vpop.f32.mrf.mxu0 }
 0x60c   :  { %v1811_v33 = vsel %vm167_vm1, %v1807_v32, -inf }
 0x60d   :  { %1812 = vmax.xlane.f32.xlu1 %v1811_v33  ;;  %v2586_v34 = vpop.f32.mrf.mxu0 }
 0x60f   :  { %v1972_v35 = vpop.f32.mrf.mxu0 }
 0x610   :  { %v1976_v36 = vsel %vm167_vm1, %v1972_v35, -inf }
 0x611   :  { %1977 = vmax.xlane.f32.xlu0 %v1976_v36  ;;  %v2596_v37 = vpop.f32.mrf.mxu0 }
 0x613   :  { %v2137_v38 = vpop.f32.mrf.mxu0 }
 0x614   :  { %v2141_v40 = vsel %vm167_vm1, %v2137_v38, -inf }
 0x615   :  { %v2606_v39 = vpop.f32.mrf.mxu0 }
 0x61e   :  { %1310 = vrot.lane.b32.xlu1 %v3134_v63, %s2917_s1 }
 0x627   :  { %1145 = vrot.lane.b32.xlu0 %v3134_v63, %s2918_s6 }
 0x642   :  { %2142 = vmax.xlane.f32.xlu1 %v2141_v40 }
 0x653   :  { %1475 = vrot.lane.b32.xlu1 %v3134_v63, %s2919_s8 }
 0x67d   :  { %v971_v41 = vpop.xlane.xlu1 %970 }
 0x67e   :  { %v972_v42 = vsub.f32 %v965_v17, %v971_v41 }
 0x680   :  { %v973_v43 = vmul.f32 1.442695, %v972_v42 }
 0x682   :  { %2671 = vpow2.f32 %v973_v43 }
 0x686   :  { %v1136_v44 = vpop.xlane.xlu0 %1135 }
 0x687   :  { %v1137_v45 = vsub.f32 %v1130_v20, %v1136_v44 }
 0x689   :  { %v1138_v47 = vmul.f32 1.442695, %v1137_v45 }
 0x68a   :  { %v1301_v48 = vpop.xlane.xlu0 %1300 }
 0x68b   :  { %2673 = vpow2.f32 %v1138_v47  ;;  %v1302_v49 = vsub.f32 %v1295_v23, %v1301_v48 }
 0x68d   :  { %v1303_v52 = vmul.f32 1.442695, %v1302_v49 }
 0x68e   :  { %v1466_v60 = vpop.xlane.xlu1 %1465 }
 0x68f   :  { %v2672_v53 = vpop.eup %2671  ;;  %2675 = vpow2.f32 %v1303_v52  ;;  %v1467_v61 = vsub.f32 %v1460_v26, %v1466_v60  ;;  %v2245_v60 = vld [vmem:[#allocation14 + $0x10] sm:$0xff] }
 0x690   :  { %v975_v54 = vsel %vm167_vm1, %v2672_v53, 0.0 }
 0x691   :  { %976 = vadd.xlane.f32.xlu0 %v975_v54  ;;  %v1468_v63 = vmul.f32 1.442695, %v1467_v61  ;;  %v2244_v61 = vld [vmem:[#allocation14 + $0x8] sm:$0xff] }
 0x692   :  { %v1648_v62 = vpop.xlane.xlu0 %1647 }
 0x693   :  { %v1649_v55 = vsub.f32 %v1642_v29, %v1648_v62  ;;  %2677 = vpow2.f32 %v1468_v63  ;;  %v2243_v62 = vld [vmem:[#allocation14] sm:$0xff] }
 0x695   :  { %v1650_v2 = vmul.f32 1.442695, %v1649_v55 }
 0x696   :  { %v1813_v51 = vpop.xlane.xlu1 %1812 }
 0x697   :  { %v1814_v50 = vsub.f32 %v1807_v32, %v1813_v51  ;;  %2679 = vpow2.f32 %v1650_v2 }
 0x698   :  { %v2674_v56 = vpop.eup %2673 }
 0x699   :  { %v1140_v57 = vsel %vm167_vm1, %v2674_v56, 0.0  ;;  %v1815_v3 = vmul.f32 1.442695, %v1814_v50 }
 0x69a   :  { %1141 = vadd.xlane.f32.xlu1 %v1140_v57  ;;  %v1978_v1 = vpop.xlane.xlu0 %1977  ;;  %v1311_v6 = vpop.permute.xlu1 %1310 }
 0x69b   :  { %v1979_v4 = vsub.f32 %v1972_v35, %v1978_v1  ;;  %2681 = vpow2.f32 %v1815_v3 }
 0x69c   :  { %v3203_v58 = vpop.eup %2675 }
 0x69d   :  { %v1305_v59 = vsel %vm167_vm1, %v3203_v58, 0.0  ;;  %v1980_v5 = vmul.f32 1.442695, %v1979_v4 }
 0x69e   :  { %1306 = vadd.xlane.f32.xlu0 %v1305_v59  ;;  %v1146_v20 = vpop.permute.xlu0 %1145  ;;  %v2246_v59 = vld [vmem:[#allocation14 + $0x18] sm:$0xff] }
 0x69f   :  { %2683 = vpow2.f32 %v1980_v5  ;;  %2612 = vmatprep.subr.mxu0 %v2246_v59 }
 0x6a0   :  { %v2678_v7 = vpop.eup %2677  ;;  %2613 = vmatpush3.msra.mxu0 %v2246_v59 }
 0x6a1   :  { %v1470_v12 = vsel %vm167_vm1, %v2678_v7, 0.0  ;;  %2614 = vmatprep.subr.mxu0 %v2245_v60 }
 0x6a2   :  { %2615 = vmatpush3.msra.mxu0 %v2245_v60 }
 0x6a3   :  { %2616 = vmatprep.subr.mxu0 %v2244_v61 }
 0x6a4   :  { %v3210_v10 = vpop.eup %2679  ;;  %2617 = vmatpush3.msra.mxu0 %v2244_v61 }
 0x6a5   :  { %v1652_v14 = vsel %vm167_vm1, %v3210_v10, 0.0  ;;  %2618 = vmatprep.subr.mxu0 %v2243_v62 }
 0x6a6   :  { %2619 = vmatpush3.msra.mxu0 %v2243_v62 }
 0x6a8   :  { %v3213_v13 = vpop.eup %2681 }
 0x6a9   :  { %v1817_v15 = vsel %vm167_vm1, %v3213_v13, 0.0 }
 0x6ab   :  { %1657 = vrot.lane.b32.xlu1 %v3138_v46, %s2916_s18 }
 0x6ac   :  { %v3219_v16 = vpop.eup %2683 }
 0x6ad   :  { %v1982_v17 = vsel %vm167_vm1, %v3219_v16, 0.0 }
 0x6b4   :  { %1822 = vrot.lane.b32.xlu0 %v3138_v46, %s2918_s6 }
 0x6cb   :  { %v2143_v8 = vpop.xlane.xlu1 %2142 }
 0x6cc   :  { %v2144_v9 = vsub.f32 %v2137_v38, %v2143_v8 }
 0x6ce   :  { %v2145_v11 = vmul.f32 1.442695, %v2144_v9 }
 0x6cf   :  { %1471 = vadd.xlane.f32.xlu1 %v1470_v12  ;;  %v1476_v22 = vpop.permute.xlu1 %1475 }
 0x6d0   :  { %2685 = vpow2.f32 %v2145_v11 }
 0x6d3   :  { %1653 = vadd.xlane.f32.xlu0 %v1652_v14  ;;  %1818 = vadd.xlane.f32.xlu1 %v1817_v15 }
 0x6d7   :  { %1983 = vadd.xlane.f32.xlu0 %v1982_v17 }
 0x6dd   :  { %v3223_v18 = vpop.eup %2685 }
 0x6de   :  { %v2147_v19 = vsel %vm167_vm1, %v3223_v18, 0.0 }
 0x6df   :  { %2148 = vadd.xlane.f32.xlu0 %v2147_v19 }
 0x6e4   :  { %1987 = vrot.lane.b32.xlu1 %v3138_v46, %s2917_s1 }
 0x6f5   :  { %2152 = vrot.lane.b32.xlu0 %v3138_v46, %s2919_s8 }
 0x71a   :  { %v977_v21 = vpop.xlane.xlu0 %976 }
 0x71b   :  { %2687 = vrcp.f32 %v977_v21 }
 0x723   :  { %v1142_v23 = vpop.xlane.xlu1 %1141 }
 0x724   :  { %2689 = vrcp.f32 %v1142_v23 }
 0x727   :  { %v1307_v24 = vpop.xlane.xlu0 %1306  ;;  %v1658_v30 = vpop.permute.xlu1 %1657 }
 0x728   :  { %v2688_v25 = vpop.eup %2687  ;;  %2691 = vrcp.f32 %v1307_v24 }
 0x729   :  { %v979_v26 = vmul.f32 %v2688_v25, %v2672_v53 }
 0x72b   :  { %2540 = vmatmul.mubr.msk.f32.vlgmr.msra.gmra.mxu1 %vm167_vm1, %v979_v26  ;;  %v1823_v31 = vpop.permute.xlu0 %1822 }
 0x72c   :  { %2548 = vmatpush3.msra.mxu1 %v1146_v20  ;;  %2549 = vmatprep.mubr.msk.f32.mxu1 %vm2906_vm0, %v2905_v0 }
 0x72d   :  { %2557 = vmatprep.subr.mxu1 %v2905_v0 }
 0x731   :  { %v2690_v27 = vpop.eup %2689 }
 0x732   :  { %v1144_v46 = vmul.f32 %v2690_v27, %v2674_v56 }
 0x734   :  { %2550 = vmatmul.mubr.msk.f32.vlgmr.msra.gmra.mxu1 %vm167_vm1, %v1144_v46 }
 0x735   :  { %v2692_v28 = vpop.eup %2691  ;;  %2558 = vmatpush3.msra.mxu1 %v1311_v6  ;;  %2559 = vmatprep.mubr.msk.f32.mxu1 %vm2906_vm0, %v2905_v0 }
 0x736   :  { %2567 = vmatprep.subr.mxu1 %v2905_v0  ;;  %v1309_v29 = vmul.f32 %v2692_v28, %v3203_v58 }
 0x738   :  { %2560 = vmatmul.mubr.msk.f32.vlgmr.msra.gmra.mxu1 %vm167_vm1, %v1309_v29 }
 0x739   :  { %2568 = vmatpush3.msra.mxu1 %v1476_v22  ;;  %2569 = vmatprep.mubr.msk.f32.mxu1 %vm2906_vm0, %v2905_v0 }
 0x73a   :  { %2577 = vmatprep.subr.mxu1 %v2905_v0 }
 0x758   :  { %v1472_v32 = vpop.xlane.xlu1 %1471 }
 0x759   :  { %2693 = vrcp.f32 %v1472_v32 }
 0x75c   :  { %v1654_v33 = vpop.xlane.xlu0 %1653  ;;  %v1819_v34 = vpop.xlane.xlu1 %1818 }
 0x75d   :  { %2695 = vrcp.f32 %v1654_v33 }
 0x75e   :  { %2697 = vrcp.f32 %v1819_v34 }
 0x760   :  { %v1984_v35 = vpop.xlane.xlu0 %1983  ;;  %v1988_v44 = vpop.permute.xlu1 %1987 }
 0x761   :  { %2699 = vrcp.f32 %v1984_v35 }
 0x766   :  { %v2694_v36 = vpop.eup %2693 }
 0x767   :  { %v1474_v37 = vmul.f32 %v2694_v36, %v2678_v7 }
 0x768   :  { %v2149_v38 = vpop.xlane.xlu0 %2148 }
 0x769   :  { %2701 = vrcp.f32 %v2149_v38  ;;  %2570 = vmatmul.mubr.msk.f32.vlgmr.msra.gmra.mxu1 %vm167_vm1, %v1474_v37 }
 0x76a   :  { %v2696_v39 = vpop.eup %2695  ;;  %2578 = vmatpush3.msra.mxu1 %v1658_v30  ;;  %2579 = vmatprep.mubr.msk.f32.mxu1 %vm2906_vm0, %v2905_v0 }
 0x76b   :  { %2587 = vmatprep.subr.mxu1 %v2905_v0  ;;  %v1656_v40 = vmul.f32 %v2696_v39, %v3210_v10  ;;  %v2698_v41 = vpop.eup %2697 }
 0x76c   :  { %v1821_v42 = vmul.f32 %v2698_v41, %v3213_v13  ;;  %v2153_v47 = vpop.permute.xlu0 %2152 }
 0x76d   :  { %2580 = vmatmul.mubr.msk.f32.vlgmr.msra.gmra.mxu1 %vm167_vm1, %v1656_v40 }
 0x76e   :  { %2588 = vmatpush3.msra.mxu1 %v1823_v31  ;;  %2589 = vmatprep.mubr.msk.f32.mxu1 %vm2906_vm0, %v2905_v0  ;;  %v2700_v43 = vpop.eup %2699 }
 0x76f   :  { %2597 = vmatprep.subr.mxu1 %v2905_v0  ;;  %v1986_v45 = vmul.f32 %v2700_v43, %v3219_v16 }
 0x771   :  { %2590 = vmatmul.mubr.msk.f32.vlgmr.msra.gmra.mxu1 %vm167_vm1, %v1821_v42 }
 0x772   :  { %2598 = vmatpush3.msra.mxu1 %v1988_v44  ;;  %2599 = vmatprep.mubr.msk.f32.mxu1 %vm2906_vm0, %v2905_v0 }
 0x773   :  { %2607 = vmatprep.subr.mxu1 %v2905_v0 }
 0x775   :  { %2600 = vmatmul.mubr.msk.f32.vlgmr.msra.gmra.mxu1 %vm167_vm1, %v1986_v45 }
 0x776   :  { %v2702_v48 = vpop.eup %2701  ;;  %2608 = vmatpush3.msra.mxu1 %v2153_v47  ;;  %2609 = vmatprep.mubr.msk.f32.mxu1 %vm2906_vm0, %v2905_v0 }
 0x777   :  { %v2151_v49 = vmul.f32 %v2702_v48, %v3223_v18  ;;  %v2404_v18 = vld [vmem:[%s3299_s16] ss:$0 sm:$0xff] }
 0x779   :  { %2610 = vmatmul.mubr.msk.f32.vlgmr.msra.gmra.mxu1 %vm167_vm1, %v2151_v49 }
 0x7eb   :  { %v1052_v52 = vpop.f32.mrf.mxu1 }
 0x7ed   :  { %v2541_v53 = vpop.f32.mrf.mxu1 }
 0x7f4   :  { %v1217_v54 = vpop.f32.mrf.mxu1 }
 0x7f5   :  { %1552 = vrot.lane.b32.xlu1 %v1217_v54, %s2899_s21 }
 0x7f6   :  { %v2551_v56 = vpop.f32.mrf.mxu1 }
 0x7f8   :  { %v1382_v57 = vpop.f32.mrf.mxu1 }
 0x7f9   :  { %1556 = vrot.lane.b32.xlu0 %v1382_v57, %s2920_s13 }
 0x7fa   :  { %v2561_v58 = vpop.f32.mrf.mxu1 }
 0x829   :  { %v1547_v0 = vpop.f32.mrf.mxu1 }
 0x82a   :  { %1560 = vrot.lane.b32.xlu0 %v1547_v0, %s2921_s15 }
 0x82b   :  { %v2571_v51 = vpop.f32.mrf.mxu1 }
 0x82d   :  { %v1729_v55 = vpop.f32.mrf.mxu1 }
 0x82f   :  { %v2581_v63 = vpop.f32.mrf.mxu1 }
 0x831   :  { %v1894_v50 = vpop.f32.mrf.mxu1 }
 0x832   :  { %2229 = vrot.lane.b32.xlu1 %v1894_v50, %s2899_s21 }
 0x833   :  { %v2591_v1 = vpop.f32.mrf.mxu1 }
 0x835   :  { %v2059_v2 = vpop.f32.mrf.mxu1 }
 0x836   :  { %2233 = vrot.lane.b32.xlu1 %v2059_v2, %s2920_s13 }
 0x837   :  { %v2601_v3 = vpop.f32.mrf.mxu1 }
 0x839   :  { %v2224_v4 = vpop.f32.mrf.mxu1 }
 0x83a   :  { %2237 = vrot.lane.b32.xlu0 %v2224_v4, %s2921_s15 }
 0x83b   :  { %v2611_v5 = vpop.f32.mrf.mxu1 }
 0x867   :  { %v1553_v6 = vpop.permute.xlu1 %1552 }
 0x868   :  { %v1563_v8 = vsel %vm167_vm1, %v1052_v52, %v1553_v6 }
 0x86b   :  { %v1557_v7 = vpop.permute.xlu0 %1556 }
 0x86c   :  { %v1564_v9 = vsel %vm327_vm2, %v1563_v8, %v1557_v7 }
 0x89c   :  { %v1561_v10 = vpop.permute.xlu0 %1560 }
 0x89d   :  { %v1566_v11 = vsel %vm1565_vm4, %v1564_v9, %v1561_v10 }
 0x89e   :  { %2620 = vmatprep.mubr.msk.f32.mxu0 %vm417_vm3, %v1566_v11 }
 0x8a4   :  { %v2230_v12 = vpop.permute.xlu1 %2229 }
 0x8a5   :  { %v2240_v14 = vsel %vm167_vm1, %v1729_v55, %v2230_v12 }
 0x8a8   :  { %v2234_v13 = vpop.permute.xlu1 %2233 }
 0x8a9   :  { %v2241_v15 = vsel %vm327_vm2, %v2240_v14, %v2234_v13 }
 0x8ac   :  { %v2238_v16 = vpop.permute.xlu0 %2237 }
 0x8ad   :  { %v2242_v17 = vsel %vm1565_vm4, %v2241_v15, %v2238_v16 }
 0x8ae   :  { %2621 = vmatmul.mubr.msk.f32.vlgmr.msra.gmra.mxu0 %vm417_vm3, %v2242_v17 }
 0x96e   :  { %v2622_v19 = vpop.f32.mrf.mxu0 }
 0x96f   :  { %v2332_v20 = vadd.f32 %v2622_v19, %v2404_v18 }
 0x970   :  { %v2326_v21 = vpop.f32.mrf.mxu0 }
 0x971   :  { %2336 = vst.msk [vmem:[#allocation16 + $0x8] sm:$0xff] %vm417_vm3, %v2332_v20  ;;  %v2327_v22 = vadd.f32 %v2404_v18, %v2326_v21 }
 0x973   :  { %2335 = vst.msk [vmem:[#allocation16] sm:$0xff] %vm417_vm3, %v2327_v22 }
 0x974   :  { %2874 = shalt.err (!%p2871_p2)
}
 0x975   :  { %2348 = dma.vmem_to_hbm [thread:$0]  %s2343_s7, 256, %s3300_s17, [#allocation4], %s2898_s20, %s2898_s20, %s2899_s21  }
 0x976   :  { %2893 = dma.done.wait [#allocation4], 256  }
 0x977   :  { %2894 = vsyncadd [#allocation4], 4294967040 }
 0x978   :  { %2352 = vsyncpa [#allocation3], 1 }
 0x979   :  { %2353 = vsyncpa [#allocation6], 1 }
 0x97a   :  { %2354 = vsyncpa [#allocation9], 1 }
 0x97b   :  { %2355 = vsyncpa [#allocation12], 1 }
 0x97c   :  { %2356 = vsyncpa [#allocation15], 1 }
 0x97d   :  { %2357 = vsyncpa [#allocation4], 1 }

</bundles_post_ra>
